<compile_context>
chip_gen: v7x
topology: tpu7x:2x2x1
jax: 0.10.0
libtpu: 0.0.40
codegen_flags: <defaults>
</compile_context>

<pallas_src>
from functools import partial

import jax
import jax.numpy as jnp
from jax import lax
from jax.experimental import pallas as pl
from jax.experimental.pallas import tpu as pltpu

INPUT_DIM = 13
HIDDEN = 64
NUM_OUTPUTS = 10
HIDDEN_PAD = 128          # zero-padded hidden size used inside the kernel


def _kernel(T, B, Hp,
            x_ref,                                  # (T*B, 13) time-major, flattened
            wih_f_ref, whh_f_ref, b_f_ref,          # fwd LSTM ([i,f,o,g] cols, padded to Hp)
            wih_b_ref, whh_b_ref, b_b_ref,          # bwd LSTM
            fcwf_ref, fcwb_ref, fcb_ref,            # fc split into fwd/bwd halves
            out_ref,                                # (B, num_outputs)
            zx_ref):                                # (T*B, 4*Hp) VMEM scratch
    H3 = 3 * Hp
    w_hh_f = whh_f_ref[...]

    # ---- hoisted input projection + bias for all timesteps: one matmul ----
    zx_ref[...] = (jnp.dot(x_ref[...], wih_f_ref[...],
                           preferred_element_type=jnp.float32)
                   + b_f_ref[...])

    def gates(z):
        # gate order [i, f, o, g]: one contiguous lane-aligned sigmoid block + tanh block
        s = jax.nn.sigmoid(z[:, :H3])
        g = jnp.tanh(z[:, H3:])
        return s[:, :Hp], s[:, Hp:2 * Hp], s[:, 2 * Hp:H3], g

    h0 = jnp.zeros((B, Hp), jnp.float32)
    c0 = jnp.zeros((B, Hp), jnp.float32)

    # ---- forward direction: serial recurrence, fully unrolled ----
    def fwd_body(t, carry):
        h, c = carry
        row = pl.multiple_of(t * B, B)
        z = zx_ref[pl.ds(row, B), :] + jnp.dot(h, w_hh_f,
                                               preferred_element_type=jnp.float32)
        i, f, o, g = gates(z)
        c = f * c + i * g
        h = o * jnp.tanh(c)
        return h, c

    h_fwd, _ = lax.fori_loop(0, T, fwd_body, (h0, c0), unroll=True)

    # ---- backward direction output at t = T-1: its first step from zero state,
    #      so the h @ W_hh_b term is identically zero and is skipped. ----
    x_last = x_ref[pl.ds((T - 1) * B, B), :]
    z_b = (jnp.dot(x_last, wih_b_ref[...], preferred_element_type=jnp.float32)
           + b_b_ref[...])
    i, f, o, g = gates(z_b)
    h_bwd = o * jnp.tanh(i * g)

    # Dropout(p=0.3) is the identity at inference.
    # fc(concat(h_fwd, h_bwd)) == h_fwd @ fc_w[:H] + h_bwd @ fc_w[H:] + fc_b
    out_ref[...] = (jnp.dot(h_fwd, fcwf_ref[...], preferred_element_type=jnp.float32)
                    + jnp.dot(h_bwd, fcwb_ref[...], preferred_element_type=jnp.float32)
                    + fcb_ref[...])


def init_params(key, num_outputs=NUM_OUTPUTS):
    """Logical parameters (PyTorch gate order [i,f,g,o]; weights pre-transposed)."""
    ks = jax.random.split(key, 10)
    k_lstm = 1.0 / jnp.sqrt(HIDDEN)
    k_fc = 1.0 / jnp.sqrt(2 * HIDDEN)

    def u(k, shape, bound):
        return jax.random.uniform(k, shape, jnp.float32, -bound, bound)

    return {
        "w_ih_f": u(ks[0], (INPUT_DIM, 4 * HIDDEN), k_lstm),
        "w_hh_f": u(ks[1], (HIDDEN, 4 * HIDDEN), k_lstm),
        "b_f":    (u(ks[2], (1, 4 * HIDDEN), k_lstm)
                   + u(ks[3], (1, 4 * HIDDEN), k_lstm)),     # b_ih + b_hh
        "w_ih_b": u(ks[4], (INPUT_DIM, 4 * HIDDEN), k_lstm),
        "w_hh_b": u(ks[5], (HIDDEN, 4 * HIDDEN), k_lstm),
        "b_b":    (u(ks[6], (1, 4 * HIDDEN), k_lstm)
                   + u(ks[7], (1, 4 * HIDDEN), k_lstm)),
        "fc_w": u(ks[8], (2 * HIDDEN, num_outputs), k_fc),
        "fc_b": u(ks[9], (1, num_outputs), k_fc),
    }


def _reorder_and_pad_gates(w, H, Hp):
    """(rows, 4H) gate order [i,f,g,o] -> (rows, 4Hp) gate order [i,f,o,g], zero-padded."""
    gi, gf, gg, go = w[:, :H], w[:, H:2 * H], w[:, 2 * H:3 * H], w[:, 3 * H:]
    pad = ((0, 0), (0, Hp - H))
    return jnp.concatenate([jnp.pad(gi, pad), jnp.pad(gf, pad),
                            jnp.pad(go, pad), jnp.pad(gg, pad)], axis=1)


def _prepare_kernel_params(params, Hp=HIDDEN_PAD):
    """Host-side weight massaging: gate reorder, hidden zero-padding, fc split."""
    H = HIDDEN

    def prep_hh(w):
        w = _reorder_and_pad_gates(w, H, Hp)
        return jnp.pad(w, ((0, Hp - H), (0, 0)))

    fc_w = params["fc_w"]
    return {
        "w_ih_f": _reorder_and_pad_gates(params["w_ih_f"], H, Hp),
        "w_hh_f": prep_hh(params["w_hh_f"]),
        "b_f":    _reorder_and_pad_gates(params["b_f"], H, Hp),
        "w_ih_b": _reorder_and_pad_gates(params["w_ih_b"], H, Hp),
        "w_hh_b": prep_hh(params["w_hh_b"]),
        "b_b":    _reorder_and_pad_gates(params["b_b"], H, Hp),
        "fc_w_f": jnp.pad(fc_w[:H], ((0, Hp - H), (0, 0))),
        "fc_w_b": jnp.pad(fc_w[H:], ((0, Hp - H), (0, 0))),
        "fc_b":   params["fc_b"],
    }


def pronunciation_lstm_forward(x, params, *, hidden_pad=HIDDEN_PAD):
    """x: (B, T, 13) batch-first float32, same convention as the PyTorch module."""
    B, T, D = x.shape
    assert D == INPUT_DIM
    num_outputs = params["fc_w"].shape[1]
    B_pad = ((B + 7) // 8) * 8             # f32 sublane multiple

    kp = _prepare_kernel_params(params, hidden_pad)

    x = x.astype(jnp.float32)
    if B_pad != B:
        x = jnp.pad(x, ((0, B_pad - B), (0, 0), (0, 0)))
    # time-major, flattened to 2-D so the hoisted input projection is a single
    # lane-dense matmul in the kernel: rows [t*B_pad, (t+1)*B_pad) = timestep t.
    x_2d = jnp.transpose(x, (1, 0, 2)).reshape(T * B_pad, D)

    vmem = pl.BlockSpec(memory_space=pltpu.MemorySpace.VMEM)
    out = pl.pallas_call(
        partial(_kernel, T, B_pad, hidden_pad),
        out_shape=jax.ShapeDtypeStruct((B_pad, num_outputs), jnp.float32),
        in_specs=[vmem] * 10,
        out_specs=vmem,
        scratch_shapes=[pltpu.VMEM((T * B_pad, 4 * hidden_pad), jnp.float32)],
    )(x_2d,
      kp["w_ih_f"], kp["w_hh_f"], kp["b_f"],
      kp["w_ih_b"], kp["w_hh_b"], kp["b_b"],
      kp["fc_w_f"], kp["fc_w_b"], kp["fc_b"])
    return out[:B]


def reference_forward(x, params):
    """Pure-JAX reference (mirrors the PyTorch forward semantics, eval mode)."""
    B, T, D = x.shape
    H = HIDDEN

    def cell(x_t, h, c, w_ih, w_hh, b):
        z = x_t @ w_ih + h @ w_hh + b
        i = jax.nn.sigmoid(z[:, :H])
        f = jax.nn.sigmoid(z[:, H:2 * H])
        g = jnp.tanh(z[:, 2 * H:3 * H])
        o = jax.nn.sigmoid(z[:, 3 * H:])
        c = f * c + i * g
        return o * jnp.tanh(c), c

    h = jnp.zeros((B, H), jnp.float32)
    c = jnp.zeros((B, H), jnp.float32)
    for t in range(T):
        h, c = cell(x[:, t, :], h, c,
                    params["w_ih_f"], params["w_hh_f"], params["b_f"])
    h_b, _ = cell(x[:, T - 1, :], jnp.zeros((B, H)), jnp.zeros((B, H)),
                  params["w_ih_b"], params["w_hh_b"], params["b_b"])
    feat = jnp.concatenate([h, h_b], axis=-1)
    return feat @ params["fc_w"] + params["fc_b"]


if __name__ == "__main__":
    key = jax.random.PRNGKey(0)
    k_param, k_x = jax.random.split(key)

    B, T = 2, 8
    x = jax.random.normal(k_x, (B, T, INPUT_DIM), jnp.float32)
    params = init_params(k_param)

    out = pronunciation_lstm_forward(x, params)
    out = jax.block_until_ready(out)

    ref = reference_forward(x, params)
    assert out.shape == (B, NUM_OUTPUTS)
    assert jnp.allclose(out, ref, atol=2e-3, rtol=2e-3), "mismatch vs JAX reference"

    print("KERNEL_OK")
</pallas_src>

<mosaic_0001>
module attributes {stable_mosaic.version = 11 : i64} {
  func.func @_kernel(%arg0: memref<64x13xf32, #tpu.memory_space<vmem>>, %arg1: memref<13x512xf32, #tpu.memory_space<vmem>>, %arg2: memref<128x512xf32, #tpu.memory_space<vmem>>, %arg3: memref<1x512xf32, #tpu.memory_space<vmem>>, %arg4: memref<13x512xf32, #tpu.memory_space<vmem>>, %arg5: memref<128x512xf32, #tpu.memory_space<vmem>>, %arg6: memref<1x512xf32, #tpu.memory_space<vmem>>, %arg7: memref<128x10xf32, #tpu.memory_space<vmem>>, %arg8: memref<128x10xf32, #tpu.memory_space<vmem>>, %arg9: memref<1x10xf32, #tpu.memory_space<vmem>>, %arg10: memref<8x10xf32, #tpu.memory_space<vmem>>, %arg11: memref<64x512xf32, #tpu.memory_space<vmem>>) attributes {dimension_semantics = [], scalar_prefetch = 0 : i64, scratch_operands = 1 : i64, tpu.core_type = #tpu.core_type<tc>} {
    %c0 = arith.constant 0 : index
    %c0_0 = arith.constant 0 : index
    %0 = vector.load %arg2[%c0, %c0_0] : memref<128x512xf32, #tpu.memory_space<vmem>>, vector<128x512xf32>
    %c0_1 = arith.constant 0 : index
    %c0_2 = arith.constant 0 : index
    %1 = vector.load %arg0[%c0_1, %c0_2] : memref<64x13xf32, #tpu.memory_space<vmem>>, vector<64x13xf32>
    %c0_3 = arith.constant 0 : index
    %c0_4 = arith.constant 0 : index
    %2 = vector.load %arg1[%c0_3, %c0_4] : memref<13x512xf32, #tpu.memory_space<vmem>>, vector<13x512xf32>
    %cst = arith.constant dense<0.000000e+00> : vector<64x512xf32>
    %3 = tpu.matmul %1, %2, %cst {dimension_numbers = #tpu.dot_dimension_numbers<[1], [0], [0], [1], [0, 0, 1, 1], [], []>} : vector<64x13xf32>, vector<13x512xf32>, vector<64x512xf32> -> vector<64x512xf32>
    %c0_5 = arith.constant 0 : index
    %c0_6 = arith.constant 0 : index
    %4 = vector.load %arg3[%c0_5, %c0_6] : memref<1x512xf32, #tpu.memory_space<vmem>>, vector<1x512xf32>
    %5 = vector.broadcast %4 : vector<1x512xf32> to vector<64x512xf32>
    %6 = arith.addf %3, %5 : vector<64x512xf32>
    %c0_7 = arith.constant 0 : index
    %c0_8 = arith.constant 0 : index
    %7 = vector.load %arg11[%c0_7, %c0_8] : memref<64x512xf32, #tpu.memory_space<vmem>>, vector<64x512xf32>
    tpu.vector_store %arg11[%c0_7, %c0_8], %6 {strides = array<i32>} : memref<64x512xf32, #tpu.memory_space<vmem>>, vector<64x512xf32>,
    %cst_9 = arith.constant 0.000000e+00 : f32
    %8 = vector.broadcast %cst_9 : f32 to vector<8x128xf32>
    %cst_10 = arith.constant 0.000000e+00 : f32
    %9 = vector.broadcast %cst_10 : f32 to vector<8x128xf32>
    %c0_i32 = arith.constant 0 : i32
    %c8_i32 = arith.constant 8 : i32
    %10 = arith.muli %c0_i32, %c8_i32 : i32
    %11 = tpu.assume_multiple %10, 8 : i32
    %12 = arith.index_cast %11 : i32 to index
    %c0_11 = arith.constant 0 : index
    %13 = vector.load %arg11[%12, %c0_11] : memref<64x512xf32, #tpu.memory_space<vmem>>, vector<8x512xf32>
    %cst_12 = arith.constant dense<0.000000e+00> : vector<8x512xf32>
    %14 = tpu.matmul %8, %0, %cst_12 {dimension_numbers = #tpu.dot_dimension_numbers<[1], [0], [0], [1], [0, 0, 1, 1], [], []>} : vector<8x128xf32>, vector<128x512xf32>, vector<8x512xf32> -> vector<8x512xf32>
    %15 = arith.addf %13, %14 : vector<8x512xf32>
    %16 = vector.extract_strided_slice %15 {offsets = [0, 0], sizes = [8, 384], strides = [1, 1]} : vector<8x512xf32> to vector<8x384xf32>
    %17 = arith.negf %16 : vector<8x384xf32>
    %18 = math.exp %17 : vector<8x384xf32>
    %cst_13 = arith.constant 1.000000e+00 : f32
    %19 = vector.broadcast %cst_13 : f32 to vector<8x384xf32>
    %20 = arith.addf %19, %18 : vector<8x384xf32>
    %21 = arith.divf %19, %20 : vector<8x384xf32>
    %22 = vector.extract_strided_slice %15 {offsets = [0, 384], sizes = [8, 128], strides = [1, 1]} : vector<8x512xf32> to vector<8x128xf32>
    %23 = math.tanh %22 : vector<8x128xf32>
    %24 = vector.extract_strided_slice %21 {offsets = [0, 0], sizes = [8, 128], strides = [1, 1]} : vector<8x384xf32> to vector<8x128xf32>
    %25 = vector.extract_strided_slice %21 {offsets = [0, 128], sizes = [8, 128], strides = [1, 1]} : vector<8x384xf32> to vector<8x128xf32>
    %26 = vector.extract_strided_slice %21 {offsets = [0, 256], sizes = [8, 128], strides = [1, 1]} : vector<8x384xf32> to vector<8x128xf32>
    %27 = arith.mulf %25, %9 : vector<8x128xf32>
    %28 = arith.mulf %24, %23 : vector<8x128xf32>
    %29 = arith.addf %27, %28 : vector<8x128xf32>
    %30 = math.tanh %29 : vector<8x128xf32>
    %31 = arith.mulf %26, %30 : vector<8x128xf32>
    %c1_i32 = arith.constant 1 : i32
    %c8_i32_14 = arith.constant 8 : i32
    %32 = arith.muli %c1_i32, %c8_i32_14 : i32
    %33 = tpu.assume_multiple %32, 8 : i32
    %34 = arith.index_cast %33 : i32 to index
    %c0_15 = arith.constant 0 : index
    %35 = vector.load %arg11[%34, %c0_15] : memref<64x512xf32, #tpu.memory_space<vmem>>, vector<8x512xf32>
    %cst_16 = arith.constant dense<0.000000e+00> : vector<8x512xf32>
    %36 = tpu.matmul %31, %0, %cst_16 {dimension_numbers = #tpu.dot_dimension_numbers<[1], [0], [0], [1], [0, 0, 1, 1], [], []>} : vector<8x128xf32>, vector<128x512xf32>, vector<8x512xf32> -> vector<8x512xf32>
    %37 = arith.addf %35, %36 : vector<8x512xf32>
    %38 = vector.extract_strided_slice %37 {offsets = [0, 0], sizes = [8, 384], strides = [1, 1]} : vector<8x512xf32> to vector<8x384xf32>
    %39 = arith.negf %38 : vector<8x384xf32>
    %40 = math.exp %39 : vector<8x384xf32>
    %cst_17 = arith.constant 1.000000e+00 : f32
    %41 = vector.broadcast %cst_17 : f32 to vector<8x384xf32>
    %42 = arith.addf %41, %40 : vector<8x384xf32>
    %43 = arith.divf %41, %42 : vector<8x384xf32>
    %44 = vector.extract_strided_slice %37 {offsets = [0, 384], sizes = [8, 128], strides = [1, 1]} : vector<8x512xf32> to vector<8x128xf32>
    %45 = math.tanh %44 : vector<8x128xf32>
    %46 = vector.extract_strided_slice %43 {offsets = [0, 0], sizes = [8, 128], strides = [1, 1]} : vector<8x384xf32> to vector<8x128xf32>
    %47 = vector.extract_strided_slice %43 {offsets = [0, 128], sizes = [8, 128], strides = [1, 1]} : vector<8x384xf32> to vector<8x128xf32>
    %48 = vector.extract_strided_slice %43 {offsets = [0, 256], sizes = [8, 128], strides = [1, 1]} : vector<8x384xf32> to vector<8x128xf32>
    %49 = arith.mulf %47, %29 : vector<8x128xf32>
    %50 = arith.mulf %46, %45 : vector<8x128xf32>
    %51 = arith.addf %49, %50 : vector<8x128xf32>
    %52 = math.tanh %51 : vector<8x128xf32>
    %53 = arith.mulf %48, %52 : vector<8x128xf32>
    %c2_i32 = arith.constant 2 : i32
    %c8_i32_18 = arith.constant 8 : i32
    %54 = arith.muli %c2_i32, %c8_i32_18 : i32
    %55 = tpu.assume_multiple %54, 8 : i32
    %56 = arith.index_cast %55 : i32 to index
    %c0_19 = arith.constant 0 : index
    %57 = vector.load %arg11[%56, %c0_19] : memref<64x512xf32, #tpu.memory_space<vmem>>, vector<8x512xf32>
    %cst_20 = arith.constant dense<0.000000e+00> : vector<8x512xf32>
    %58 = tpu.matmul %53, %0, %cst_20 {dimension_numbers = #tpu.dot_dimension_numbers<[1], [0], [0], [1], [0, 0, 1, 1], [], []>} : vector<8x128xf32>, vector<128x512xf32>, vector<8x512xf32> -> vector<8x512xf32>
    %59 = arith.addf %57, %58 : vector<8x512xf32>
    %60 = vector.extract_strided_slice %59 {offsets = [0, 0], sizes = [8, 384], strides = [1, 1]} : vector<8x512xf32> to vector<8x384xf32>
    %61 = arith.negf %60 : vector<8x384xf32>
    %62 = math.exp %61 : vector<8x384xf32>
    %cst_21 = arith.constant 1.000000e+00 : f32
    %63 = vector.broadcast %cst_21 : f32 to vector<8x384xf32>
    %64 = arith.addf %63, %62 : vector<8x384xf32>
    %65 = arith.divf %63, %64 : vector<8x384xf32>
    %66 = vector.extract_strided_slice %59 {offsets = [0, 384], sizes = [8, 128], strides = [1, 1]} : vector<8x512xf32> to vector<8x128xf32>
    %67 = math.tanh %66 : vector<8x128xf32>
    %68 = vector.extract_strided_slice %65 {offsets = [0, 0], sizes = [8, 128], strides = [1, 1]} : vector<8x384xf32> to vector<8x128xf32>
    %69 = vector.extract_strided_slice %65 {offsets = [0, 128], sizes = [8, 128], strides = [1, 1]} : vector<8x384xf32> to vector<8x128xf32>
    %70 = vector.extract_strided_slice %65 {offsets = [0, 256], sizes = [8, 128], strides = [1, 1]} : vector<8x384xf32> to vector<8x128xf32>
    %71 = arith.mulf %69, %51 : vector<8x128xf32>
    %72 = arith.mulf %68, %67 : vector<8x128xf32>
    %73 = arith.addf %71, %72 : vector<8x128xf32>
    %74 = math.tanh %73 : vector<8x128xf32>
    %75 = arith.mulf %70, %74 : vector<8x128xf32>
    %c3_i32 = arith.constant 3 : i32
    %c8_i32_22 = arith.constant 8 : i32
    %76 = arith.muli %c3_i32, %c8_i32_22 : i32
    %77 = tpu.assume_multiple %76, 8 : i32
    %78 = arith.index_cast %77 : i32 to index
    %c0_23 = arith.constant 0 : index
    %79 = vector.load %arg11[%78, %c0_23] : memref<64x512xf32, #tpu.memory_space<vmem>>, vector<8x512xf32>
    %cst_24 = arith.constant dense<0.000000e+00> : vector<8x512xf32>
    %80 = tpu.matmul %75, %0, %cst_24 {dimension_numbers = #tpu.dot_dimension_numbers<[1], [0], [0], [1], [0, 0, 1, 1], [], []>} : vector<8x128xf32>, vector<128x512xf32>, vector<8x512xf32> -> vector<8x512xf32>
    %81 = arith.addf %79, %80 : vector<8x512xf32>
    %82 = vector.extract_strided_slice %81 {offsets = [0, 0], sizes = [8, 384], strides = [1, 1]} : vector<8x512xf32> to vector<8x384xf32>
    %83 = arith.negf %82 : vector<8x384xf32>
    %84 = math.exp %83 : vector<8x384xf32>
    %cst_25 = arith.constant 1.000000e+00 : f32
    %85 = vector.broadcast %cst_25 : f32 to vector<8x384xf32>
    %86 = arith.addf %85, %84 : vector<8x384xf32>
    %87 = arith.divf %85, %86 : vector<8x384xf32>
    %88 = vector.extract_strided_slice %81 {offsets = [0, 384], sizes = [8, 128], strides = [1, 1]} : vector<8x512xf32> to vector<8x128xf32>
    %89 = math.tanh %88 : vector<8x128xf32>
    %90 = vector.extract_strided_slice %87 {offsets = [0, 0], sizes = [8, 128], strides = [1, 1]} : vector<8x384xf32> to vector<8x128xf32>
    %91 = vector.extract_strided_slice %87 {offsets = [0, 128], sizes = [8, 128], strides = [1, 1]} : vector<8x384xf32> to vector<8x128xf32>
    %92 = vector.extract_strided_slice %87 {offsets = [0, 256], sizes = [8, 128], strides = [1, 1]} : vector<8x384xf32> to vector<8x128xf32>
    %93 = arith.mulf %91, %73 : vector<8x128xf32>
    %94 = arith.mulf %90, %89 : vector<8x128xf32>
    %95 = arith.addf %93, %94 : vector<8x128xf32>
    %96 = math.tanh %95 : vector<8x128xf32>
    %97 = arith.mulf %92, %96 : vector<8x128xf32>
    %c4_i32 = arith.constant 4 : i32
    %c8_i32_26 = arith.constant 8 : i32
    %98 = arith.muli %c4_i32, %c8_i32_26 : i32
    %99 = tpu.assume_multiple %98, 8 : i32
    %100 = arith.index_cast %99 : i32 to index
    %c0_27 = arith.constant 0 : index
    %101 = vector.load %arg11[%100, %c0_27] : memref<64x512xf32, #tpu.memory_space<vmem>>, vector<8x512xf32>
    %cst_28 = arith.constant dense<0.000000e+00> : vector<8x512xf32>
    %102 = tpu.matmul %97, %0, %cst_28 {dimension_numbers = #tpu.dot_dimension_numbers<[1], [0], [0], [1], [0, 0, 1, 1], [], []>} : vector<8x128xf32>, vector<128x512xf32>, vector<8x512xf32> -> vector<8x512xf32>
    %103 = arith.addf %101, %102 : vector<8x512xf32>
    %104 = vector.extract_strided_slice %103 {offsets = [0, 0], sizes = [8, 384], strides = [1, 1]} : vector<8x512xf32> to vector<8x384xf32>
    %105 = arith.negf %104 : vector<8x384xf32>
    %106 = math.exp %105 : vector<8x384xf32>
    %cst_29 = arith.constant 1.000000e+00 : f32
    %107 = vector.broadcast %cst_29 : f32 to vector<8x384xf32>
    %108 = arith.addf %107, %106 : vector<8x384xf32>
    %109 = arith.divf %107, %108 : vector<8x384xf32>
    %110 = vector.extract_strided_slice %103 {offsets = [0, 384], sizes = [8, 128], strides = [1, 1]} : vector<8x512xf32> to vector<8x128xf32>
    %111 = math.tanh %110 : vector<8x128xf32>
    %112 = vector.extract_strided_slice %109 {offsets = [0, 0], sizes = [8, 128], strides = [1, 1]} : vector<8x384xf32> to vector<8x128xf32>
    %113 = vector.extract_strided_slice %109 {offsets = [0, 128], sizes = [8, 128], strides = [1, 1]} : vector<8x384xf32> to vector<8x128xf32>
    %114 = vector.extract_strided_slice %109 {offsets = [0, 256], sizes = [8, 128], strides = [1, 1]} : vector<8x384xf32> to vector<8x128xf32>
    %115 = arith.mulf %113, %95 : vector<8x128xf32>
    %116 = arith.mulf %112, %111 : vector<8x128xf32>
    %117 = arith.addf %115, %116 : vector<8x128xf32>
    %118 = math.tanh %117 : vector<8x128xf32>
    %119 = arith.mulf %114, %118 : vector<8x128xf32>
    %c5_i32 = arith.constant 5 : i32
    %c8_i32_30 = arith.constant 8 : i32
    %120 = arith.muli %c5_i32, %c8_i32_30 : i32
    %121 = tpu.assume_multiple %120, 8 : i32
    %122 = arith.index_cast %121 : i32 to index
    %c0_31 = arith.constant 0 : index
    %123 = vector.load %arg11[%122, %c0_31] : memref<64x512xf32, #tpu.memory_space<vmem>>, vector<8x512xf32>
    %cst_32 = arith.constant dense<0.000000e+00> : vector<8x512xf32>
    %124 = tpu.matmul %119, %0, %cst_32 {dimension_numbers = #tpu.dot_dimension_numbers<[1], [0], [0], [1], [0, 0, 1, 1], [], []>} : vector<8x128xf32>, vector<128x512xf32>, vector<8x512xf32> -> vector<8x512xf32>
    %125 = arith.addf %123, %124 : vector<8x512xf32>
    %126 = vector.extract_strided_slice %125 {offsets = [0, 0], sizes = [8, 384], strides = [1, 1]} : vector<8x512xf32> to vector<8x384xf32>
    %127 = arith.negf %126 : vector<8x384xf32>
    %128 = math.exp %127 : vector<8x384xf32>
    %cst_33 = arith.constant 1.000000e+00 : f32
    %129 = vector.broadcast %cst_33 : f32 to vector<8x384xf32>
    %130 = arith.addf %129, %128 : vector<8x384xf32>
    %131 = arith.divf %129, %130 : vector<8x384xf32>
    %132 = vector.extract_strided_slice %125 {offsets = [0, 384], sizes = [8, 128], strides = [1, 1]} : vector<8x512xf32> to vector<8x128xf32>
    %133 = math.tanh %132 : vector<8x128xf32>
    %134 = vector.extract_strided_slice %131 {offsets = [0, 0], sizes = [8, 128], strides = [1, 1]} : vector<8x384xf32> to vector<8x128xf32>
    %135 = vector.extract_strided_slice %131 {offsets = [0, 128], sizes = [8, 128], strides = [1, 1]} : vector<8x384xf32> to vector<8x128xf32>
    %136 = vector.extract_strided_slice %131 {offsets = [0, 256], sizes = [8, 128], strides = [1, 1]} : vector<8x384xf32> to vector<8x128xf32>
    %137 = arith.mulf %135, %117 : vector<8x128xf32>
    %138 = arith.mulf %134, %133 : vector<8x128xf32>
    %139 = arith.addf %137, %138 : vector<8x128xf32>
    %140 = math.tanh %139 : vector<8x128xf32>
    %141 = arith.mulf %136, %140 : vector<8x128xf32>
    %c6_i32 = arith.constant 6 : i32
    %c8_i32_34 = arith.constant 8 : i32
    %142 = arith.muli %c6_i32, %c8_i32_34 : i32
    %143 = tpu.assume_multiple %142, 8 : i32
    %144 = arith.index_cast %143 : i32 to index
    %c0_35 = arith.constant 0 : index
    %145 = vector.load %arg11[%144, %c0_35] : memref<64x512xf32, #tpu.memory_space<vmem>>, vector<8x512xf32>
    %cst_36 = arith.constant dense<0.000000e+00> : vector<8x512xf32>
    %146 = tpu.matmul %141, %0, %cst_36 {dimension_numbers = #tpu.dot_dimension_numbers<[1], [0], [0], [1], [0, 0, 1, 1], [], []>} : vector<8x128xf32>, vector<128x512xf32>, vector<8x512xf32> -> vector<8x512xf32>
    %147 = arith.addf %145, %146 : vector<8x512xf32>
    %148 = vector.extract_strided_slice %147 {offsets = [0, 0], sizes = [8, 384], strides = [1, 1]} : vector<8x512xf32> to vector<8x384xf32>
    %149 = arith.negf %148 : vector<8x384xf32>
    %150 = math.exp %149 : vector<8x384xf32>
    %cst_37 = arith.constant 1.000000e+00 : f32
    %151 = vector.broadcast %cst_37 : f32 to vector<8x384xf32>
    %152 = arith.addf %151, %150 : vector<8x384xf32>
    %153 = arith.divf %151, %152 : vector<8x384xf32>
    %154 = vector.extract_strided_slice %147 {offsets = [0, 384], sizes = [8, 128], strides = [1, 1]} : vector<8x512xf32> to vector<8x128xf32>
    %155 = math.tanh %154 : vector<8x128xf32>
    %156 = vector.extract_strided_slice %153 {offsets = [0, 0], sizes = [8, 128], strides = [1, 1]} : vector<8x384xf32> to vector<8x128xf32>
    %157 = vector.extract_strided_slice %153 {offsets = [0, 128], sizes = [8, 128], strides = [1, 1]} : vector<8x384xf32> to vector<8x128xf32>
    %158 = vector.extract_strided_slice %153 {offsets = [0, 256], sizes = [8, 128], strides = [1, 1]} : vector<8x384xf32> to vector<8x128xf32>
    %159 = arith.mulf %157, %139 : vector<8x128xf32>
    %160 = arith.mulf %156, %155 : vector<8x128xf32>
    %161 = arith.addf %159, %160 : vector<8x128xf32>
    %162 = math.tanh %161 : vector<8x128xf32>
    %163 = arith.mulf %158, %162 : vector<8x128xf32>
    %c7_i32 = arith.constant 7 : i32
    %c8_i32_38 = arith.constant 8 : i32
    %164 = arith.muli %c7_i32, %c8_i32_38 : i32
    %165 = tpu.assume_multiple %164, 8 : i32
    %166 = arith.index_cast %165 : i32 to index
    %c0_39 = arith.constant 0 : index
    %167 = vector.load %arg11[%166, %c0_39] : memref<64x512xf32, #tpu.memory_space<vmem>>, vector<8x512xf32>
    %cst_40 = arith.constant dense<0.000000e+00> : vector<8x512xf32>
    %168 = tpu.matmul %163, %0, %cst_40 {dimension_numbers = #tpu.dot_dimension_numbers<[1], [0], [0], [1], [0, 0, 1, 1], [], []>} : vector<8x128xf32>, vector<128x512xf32>, vector<8x512xf32> -> vector<8x512xf32>
    %169 = arith.addf %167, %168 : vector<8x512xf32>
    %170 = vector.extract_strided_slice %169 {offsets = [0, 0], sizes = [8, 384], strides = [1, 1]} : vector<8x512xf32> to vector<8x384xf32>
    %171 = arith.negf %170 : vector<8x384xf32>
    %172 = math.exp %171 : vector<8x384xf32>
    %cst_41 = arith.constant 1.000000e+00 : f32
    %173 = vector.broadcast %cst_41 : f32 to vector<8x384xf32>
    %174 = arith.addf %173, %172 : vector<8x384xf32>
    %175 = arith.divf %173, %174 : vector<8x384xf32>
    %176 = vector.extract_strided_slice %169 {offsets = [0, 384], sizes = [8, 128], strides = [1, 1]} : vector<8x512xf32> to vector<8x128xf32>
    %177 = math.tanh %176 : vector<8x128xf32>
    %178 = vector.extract_strided_slice %175 {offsets = [0, 0], sizes = [8, 128], strides = [1, 1]} : vector<8x384xf32> to vector<8x128xf32>
    %179 = vector.extract_strided_slice %175 {offsets = [0, 128], sizes = [8, 128], strides = [1, 1]} : vector<8x384xf32> to vector<8x128xf32>
    %180 = vector.extract_strided_slice %175 {offsets = [0, 256], sizes = [8, 128], strides = [1, 1]} : vector<8x384xf32> to vector<8x128xf32>
    %181 = arith.mulf %179, %161 : vector<8x128xf32>
    %182 = arith.mulf %178, %177 : vector<8x128xf32>
    %183 = arith.addf %181, %182 : vector<8x128xf32>
    %184 = math.tanh %183 : vector<8x128xf32>
    %185 = arith.mulf %180, %184 : vector<8x128xf32>
    %c8_i32_42 = arith.constant 8 : i32
    %c56 = arith.constant 56 : index
    %c0_43 = arith.constant 0 : index
    %186 = vector.load %arg0[%c56, %c0_43] : memref<64x13xf32, #tpu.memory_space<vmem>>, vector<8x13xf32>
    %c0_44 = arith.constant 0 : index
    %c0_45 = arith.constant 0 : index
    %187 = vector.load %arg4[%c0_44, %c0_45] : memref<13x512xf32, #tpu.memory_space<vmem>>, vector<13x512xf32>
    %cst_46 = arith.constant dense<0.000000e+00> : vector<8x512xf32>
    %188 = tpu.matmul %186, %187, %cst_46 {dimension_numbers = #tpu.dot_dimension_numbers<[1], [0], [0], [1], [0, 0, 1, 1], [], []>} : vector<8x13xf32>, vector<13x512xf32>, vector<8x512xf32> -> vector<8x512xf32>
    %c0_47 = arith.constant 0 : index
    %c0_48 = arith.constant 0 : index
    %189 = vector.load %arg6[%c0_47, %c0_48] : memref<1x512xf32, #tpu.memory_space<vmem>>, vector<1x512xf32>
    %190 = vector.broadcast %189 : vector<1x512xf32> to vector<8x512xf32>
    %191 = arith.addf %188, %190 : vector<8x512xf32>
    %192 = vector.extract_strided_slice %191 {offsets = [0, 0], sizes = [8, 384], strides = [1, 1]} : vector<8x512xf32> to vector<8x384xf32>
    %193 = arith.negf %192 : vector<8x384xf32>
    %194 = math.exp %193 : vector<8x384xf32>
    %cst_49 = arith.constant 1.000000e+00 : f32
    %195 = vector.broadcast %cst_49 : f32 to vector<8x384xf32>
    %196 = arith.addf %195, %194 : vector<8x384xf32>
    %197 = arith.divf %195, %196 : vector<8x384xf32>
    %198 = vector.extract_strided_slice %191 {offsets = [0, 384], sizes = [8, 128], strides = [1, 1]} : vector<8x512xf32> to vector<8x128xf32>
    %199 = math.tanh %198 : vector<8x128xf32>
    %200 = vector.extract_strided_slice %197 {offsets = [0, 0], sizes = [8, 128], strides = [1, 1]} : vector<8x384xf32> to vector<8x128xf32>
    %201 = vector.extract_strided_slice %197 {offsets = [0, 256], sizes = [8, 128], strides = [1, 1]} : vector<8x384xf32> to vector<8x128xf32>
    %202 = arith.mulf %200, %199 : vector<8x128xf32>
    %203 = math.tanh %202 : vector<8x128xf32>
    %204 = arith.mulf %201, %203 : vector<8x128xf32>
    %c0_50 = arith.constant 0 : index
    %c0_51 = arith.constant 0 : index
    %205 = vector.load %arg7[%c0_50, %c0_51] : memref<128x10xf32, #tpu.memory_space<vmem>>, vector<128x10xf32>
    %cst_52 = arith.constant dense<0.000000e+00> : vector<8x10xf32>
    %206 = tpu.matmul %185, %205, %cst_52 {dimension_numbers = #tpu.dot_dimension_numbers<[1], [0], [0], [1], [0, 0, 1, 1], [], []>} : vector<8x128xf32>, vector<128x10xf32>, vector<8x10xf32> -> vector<8x10xf32>
    %c0_53 = arith.constant 0 : index
    %c0_54 = arith.constant 0 : index
    %207 = vector.load %arg8[%c0_53, %c0_54] : memref<128x10xf32, #tpu.memory_space<vmem>>, vector<128x10xf32>
    %cst_55 = arith.constant dense<0.000000e+00> : vector<8x10xf32>
    %208 = tpu.matmul %204, %207, %cst_55 {dimension_numbers = #tpu.dot_dimension_numbers<[1], [0], [0], [1], [0, 0, 1, 1], [], []>} : vector<8x128xf32>, vector<128x10xf32>, vector<8x10xf32> -> vector<8x10xf32>
    %209 = arith.addf %206, %208 : vector<8x10xf32>
    %c0_56 = arith.constant 0 : index
    %c0_57 = arith.constant 0 : index
    %210 = vector.load %arg9[%c0_56, %c0_57] : memref<1x10xf32, #tpu.memory_space<vmem>>, vector<1x10xf32>
    %211 = vector.broadcast %210 : vector<1x10xf32> to vector<8x10xf32>
    %212 = arith.addf %209, %211 : vector<8x10xf32>
    %c0_58 = arith.constant 0 : index
    %c0_59 = arith.constant 0 : index
    %213 = vector.load %arg10[%c0_58, %c0_59] : memref<8x10xf32, #tpu.memory_space<vmem>>, vector<8x10xf32>
    tpu.vector_store %arg10[%c0_58, %c0_59], %212 {strides = array<i32>} : memref<8x10xf32, #tpu.memory_space<vmem>>, vector<8x10xf32>,
    return
  }
}

</mosaic_0001>

<bundles_post_ra>
// kernel: tpu_custom_call.1
= control target key start
LH: loop header
LB: loop body
LE: loop exit
PB: predicated region body
PF: predicated region fallthrough
CT: control target
= control target key end

     0   :  { %15 = vsyncpa [#allocation4], 0  ;;  %s4086_s0 = inlined_call_operand.vmem [shape: f32[64,13], index: 0, kind: input, shape index: {}]   ;;  %s4087_s1 = inlined_call_operand.vmem [shape: f32[13,512], index: 1, kind: input, shape index: {}]   ;;  %s4088_s2 = inlined_call_operand.hbm [shape: f32[128,512], index: 2, kind: input, shape index: {}]   ;;  %s4089_s3 = inlined_call_operand.vmem [shape: f32[1,512], index: 3, kind: input, shape index: {}]   ;;  %s4090_s4 = inlined_call_operand.vmem [shape: f32[13,512], index: 4, kind: input, shape index: {}]   ;;  %s4091_s5 = inlined_call_operand.hbm [shape: f32[128,512], index: 5, kind: input, shape index: {}]   ;;  %s4092_s6 = inlined_call_operand.vmem [shape: f32[1,512], index: 6, kind: input, shape index: {}]   ;;  %s4093_s7 = inlined_call_operand.vmem [shape: f32[128,10], index: 7, kind: input, shape index: {}]   ;;  %s4094_s8 = inlined_call_operand.vmem [shape: f32[128,10], index: 8, kind: input, shape index: {}]   ;;  %s4095_s9 = inlined_call_operand.vmem [shape: f32[1,10], index: 9, kind: input, shape index: {}]   ;;  %s4096_s10 = inlined_call_operand.hbm [shape: f32[8,10], index: 10, kind: output, shape index: {}]  }
   0x1   :  { %16 = vsyncpa [#allocation7], 0 }
   0x2   :  { %17 = vsyncpa [#allocation5], 0  ;;  %s3308_s13 = smov [#allocation3]   ;;  %s3236_s17 = scalar_lea.hbm %s4088_s2, 8192 }
   0x3   :  { %s27_s14 = sshll.u32 %s3308_s13, 4  ;;  %p3237_p0 = scmp.ne.s32.totalorder %s4088_s2, %s3236_s17  ;;  %s28_s14 = int_to_ptr.vmem [resolvable:$true] %s27_s14 }
   0x4   :  { %p3240_p1 = scmp.lt.u32.totalorder %s3236_s17, %s4088_s2 }
   0x6   :  { %p3242_p2 = pnand %p3240_p1, %p3237_p0 }
   0x8   :  { %3245 = shalt.err (!%p3242_p2)
}
   0x9   :  { %s3246_s22 = scalar_lea.vmem %s28_s14, 8192  ;;  %p3251_p4 = scmp.lt.s32.totalorder %s28_s14, %s28_s14 }
   0xa   :  { %p3247_p3 = scmp.ne.s32.totalorder %s28_s14, %s3246_s22  ;;  %p3252_p5 = scmp.lt.s32.totalorder %s3246_s22, %s3246_s22 }
   0xc   :  { %p3253_p6 = por %p3252_p5, %p3251_p4 }
   0xe   :  { %p3254_p7 = pnand %p3253_p6, %p3247_p3 }
  0x10   :  { %3257 = shalt.err (!%p3254_p7)
}
  0x11   :  { %s3309_s23 = smov 512   ;;  %s3310_s24 = smov 32  }
  0x12   :  { %33 = dma.hbm_to_vmem [thread:$0]  %s4088_s2, 8192, %s28_s14, [#allocation4], %s3309_s23, %s3309_s23, %s3310_s24  }
  0x13   :  { %s3311_s27 = smov [#allocation6]   ;;  %s3258_s11 = scalar_lea.hbm %s4091_s5, 8192 }
  0x14   :  { %s43_s28 = sshll.u32 %s3311_s27, 4  ;;  %p3259_p8 = scmp.ne.s32.totalorder %s4091_s5, %s3258_s11  ;;  %s44_s28 = int_to_ptr.vmem [resolvable:$true] %s43_s28 }
  0x15   :  { %p3262_p9 = scmp.lt.u32.totalorder %s3258_s11, %s4091_s5 }
  0x17   :  { %p3264_p10 = pnand %p3262_p9, %p3259_p8 }
  0x19   :  { %3267 = shalt.err (!%p3264_p10)
}
  0x1a   :  { %s3268_s17 = scalar_lea.vmem %s44_s28, 8192  ;;  %p3273_p12 = scmp.lt.s32.totalorder %s44_s28, %s44_s28 }
  0x1b   :  { %p3269_p11 = scmp.ne.s32.totalorder %s44_s28, %s3268_s17  ;;  %p3274_p13 = scmp.lt.s32.totalorder %s3268_s17, %s3268_s17 }
  0x1d   :  { %p3275_p0 = por %p3274_p13, %p3273_p12 }
  0x1f   :  { %p3276_p1 = pnand %p3275_p0, %p3269_p11 }
  0x21   :  { %3279 = shalt.err (!%p3276_p1)
}
  0x22   :  { %49 = dma.hbm_to_vmem [thread:$0]  %s4091_s5, 8192, %s44_s28, [#allocation7], %s3309_s23, %s3309_s23, %s3310_s24  }
  0x23   :  { %3302 = dma.done.wait [#allocation4], 8192  }
  0x24   :  { %3303 = vsyncadd [#allocation4], 4294959104 }
  0x25   :  { %3304 = dma.done.wait [#allocation7], 8192  }
  0x26   :  { %3305 = vsyncadd [#allocation7], 4294959104  ;;  %v3312_v0 = vmov 0.0   ;;  %vm191_vm0 = vcmask 1044480   ;;  %vm3313_vm1 = vmmov 1   ;;  %v137_v2 = vld [vmem:[%s4087_s1 + $0x8] sm:$0xff] }
  0x27   :  { %268 = vmatprep.mubr.f32.mxu0 %v3312_v0  ;;  %381 = vmatprep.mubr.f32.mxu1 %v3312_v0  ;;  %vm3398_vm2 = vmpackc.low %vm191_vm0, %vm3313_vm1  ;;  %v141_v3 = vld [vmem:[%s4087_s1 + $0x28] sm:$0x1f]  ;;  %v139_v4 = vld [vmem:[%s4087_s1 + $0x18] sm:$0xff]  ;;  %vm166_vm3 = vcmask 105472   ;;  %vm3315_vm4 = vmmov 0   ;;  %s3316_s12 = smov [#allocation8]  }
  0x28   :  { %v2438_v5 = vpack.c.bf16 %v141_v3, %v137_v2  ;;  %v143_v6 = vld [vmem:[%s4087_s1 + $0x38] sm:$0x1f]  ;;  %v136_v7 = vld [vmem:[%s4087_s1] sm:$0xff]  ;;  %v138_v11 = vld [vmem:[%s4087_s1 + $0x10] sm:$0xff]  ;;  %s2264_s13 = sshll.u32 %s3316_s12, 4  ;;  %vm2256_vm5 = vcmask 80896   ;;  %s2265_s13 = int_to_ptr.vmem [resolvable:$true] %s2264_s13 }
  0x29   :  { %v140_v8 = vld [vmem:[%s4087_s1 + $0x20] sm:$0x1f]  ;;  %v2444_v9 = vpack.c.bf16 %v143_v6, %v139_v4  ;;  %v142_v12 = vld [vmem:[%s4087_s1 + $0x30] sm:$0x1f]  ;;  %v65_v15 = vld [vmem:[#allocation3 + $0x8] sm:$0xff]  ;;  %s3280_s15 = scalar_lea.vmem %s2265_s13, 128  ;;  %p3285_p3 = scmp.lt.s32.totalorder %s2265_s13, %s2265_s13 }
  0x2a   :  { %v2441_v10 = vpack.c.bf16 %v140_v8, %v136_v7  ;;  %v128_v13 = vld [vmem:[%s4086_s0] sm:$0xff]  ;;  %2440 = vmatprep.subr.msk.bf16.mxu0 %vm3398_vm2, %v2438_v5  ;;  %v2447_v14 = vpack.c.bf16 %v142_v12, %v138_v11  ;;  %v69_v16 = vld [vmem:[#allocation3 + $0x28] sm:$0xff]  ;;  %v67_v17 = vld [vmem:[#allocation3 + $0x18] sm:$0xff]  ;;  %p3281_p2 = scmp.ne.s32.totalorder %s2265_s13, %s3280_s15  ;;  %p3286_p4 = scmp.lt.s32.totalorder %s3280_s15, %s3280_s15 }
  0x2b   :  { %2446 = vmatprep.subr.msk.bf16.mxu1 %vm3398_vm2, %v2444_v9  ;;  %v3435_v18 = vpack.c.bf16 %v69_v16, %v65_v15  ;;  %v71_v19 = vld [vmem:[#allocation3 + $0x38] sm:$0xff]  ;;  %v64_v20 = vld [vmem:[#allocation3] sm:$0xff]  ;;  %v66_v24 = vld [vmem:[#allocation3 + $0x10] sm:$0xff] }
  0x2c   :  { %2443 = vmatpush1.bf16.msk.msra.mxu0 %vm3398_vm2, %v2441_v10  ;;  %v68_v21 = vld [vmem:[#allocation3 + $0x20] sm:$0xff]  ;;  %2449 = vmatpush1.bf16.msk.msra.mxu1 %vm3398_vm2, %v2447_v14  ;;  %v3439_v22 = vpack.c.bf16 %v71_v19, %v67_v17  ;;  %v70_v25 = vld [vmem:[#allocation3 + $0x30] sm:$0xff]  ;;  %v73_v27 = vld [vmem:[#allocation3 + $0x48] sm:$0xff]  ;;  %p3287_p5 = por %p3286_p4, %p3285_p3 }
  0x2d   :  { %v3441_v23 = vpack.c.bf16 %v68_v21, %v64_v20  ;;  %2451 = vmatprep.subr.bf16.mxu0 %v3435_v18  ;;  %v3444_v26 = vpack.c.bf16 %v70_v25, %v66_v24  ;;  %v77_v28 = vld [vmem:[#allocation3 + $0x68] sm:$0xff]  ;;  %v75_v29 = vld [vmem:[#allocation3 + $0x58] sm:$0xff]  ;;  %v72_v32 = vld [vmem:[#allocation3 + $0x40] sm:$0xff] }
  0x2e   :  { %2483 = vmatprep.subr.bf16.mxu1 %v3439_v22  ;;  %v3448_v30 = vpack.c.bf16 %v77_v28, %v73_v27  ;;  %v79_v31 = vld [vmem:[#allocation3 + $0x78] sm:$0xff]  ;;  %v76_v33 = vld [vmem:[#allocation3 + $0x60] sm:$0xff]  ;;  %v129_v34 = vld [vmem:[%s4086_s0 + $0x8] sm:$0xff]  ;;  %p3288_p6 = pnand %p3287_p5, %p3281_p2 }
  0x2f   :  { %2283 = vmatmul.mubr.msk.f32.vlgmr.msra.gmra.mrb[0].mxu0 %vm166_vm3, %v128_v13  ;;  %2293 = vmatmul.mubr.msk.f32.vlgmr.msra.gmra.mrb[0].mxu1 %vm166_vm3, %v128_v13  ;;  %v3455_v35 = vpack.c.bf16 %v79_v31, %v75_v29  ;;  %v3457_v36 = vpack.c.bf16 %v76_v33, %v72_v32  ;;  %v74_v37 = vld [vmem:[#allocation3 + $0x50] sm:$0xff]  ;;  %v81_v40 = vld [vmem:[#allocation3 + $0x88] sm:$0xff]  ;;  %v83_v42 = vld [vmem:[#allocation3 + $0x98] sm:$0xff] }
  0x30   :  { %2453 = vmatpush1.bf16.msra.mxu0 %v3441_v23  ;;  %v78_v38 = vld [vmem:[#allocation3 + $0x70] sm:$0xff]  ;;  %2485 = vmatpush1.bf16.msra.mxu1 %v3444_v26  ;;  %v85_v41 = vld [vmem:[#allocation3 + $0xa8] sm:$0xff]  ;;  %v87_v44 = vld [vmem:[#allocation3 + $0xb8] sm:$0xff] }
  0x31   :  { %274 = vmatprep.mubr.f32.mxu0 %v3312_v0  ;;  %v3461_v39 = vpack.c.bf16 %v78_v38, %v74_v37  ;;  %387 = vmatprep.mubr.f32.mxu1 %v3312_v0  ;;  %v3465_v43 = vpack.c.bf16 %v85_v41, %v81_v40  ;;  %v80_v45 = vld [vmem:[#allocation3 + $0x80] sm:$0xff]  ;;  %v130_v47 = vld [vmem:[%s4086_s0 + $0x10] sm:$0xff]  ;;  %v3472_v48 = vpack.c.bf16 %v87_v44, %v83_v42  ;;  %v89_v52 = vld [vmem:[#allocation3 + $0xc8] sm:$0xff] }
  0x32   :  { %2455 = vmatprep.subr.bf16.mxu0 %v3448_v30  ;;  %v84_v46 = vld [vmem:[#allocation3 + $0xa0] sm:$0xff]  ;;  %2487 = vmatprep.subr.bf16.mxu1 %v3455_v35  ;;  %v82_v49 = vld [vmem:[#allocation3 + $0x90] sm:$0xff]  ;;  %v93_v53 = vld [vmem:[#allocation3 + $0xe8] sm:$0xff] }
  0x33   :  { %2284 = vmatmul.mubr.msk.f32.gmra.mrb[2].mxu0 %vm166_vm3, %v129_v34  ;;  %v86_v50 = vld [vmem:[#allocation3 + $0xb0] sm:$0xff]  ;;  %2294 = vmatmul.mubr.msk.f32.gmra.mrb[2].mxu1 %vm166_vm3, %v129_v34  ;;  %v3476_v51 = vpack.c.bf16 %v84_v46, %v80_v45  ;;  %v91_v54 = vld [vmem:[#allocation3 + $0xd8] sm:$0xff]  ;;  %v88_v57 = vld [vmem:[#allocation3 + $0xc0] sm:$0xff]  ;;  %v3484_v59 = vpack.c.bf16 %v93_v53, %v89_v52 }
  0x34   :  { %2457 = vmatpush1.bf16.msra.mxu0 %v3457_v36  ;;  %2489 = vmatpush1.bf16.msra.mxu1 %v3461_v39  ;;  %v3480_v55 = vpack.c.bf16 %v86_v50, %v82_v49  ;;  %v95_v56 = vld [vmem:[#allocation3 + $0xf8] sm:$0xff]  ;;  %v92_v58 = vld [vmem:[#allocation3 + $0xe0] sm:$0xff]  ;;  %v90_v60 = vld [vmem:[#allocation3 + $0xd0] sm:$0xff] }
  0x35   :  { %280 = vmatprep.mubr.f32.mxu0 %v3312_v0  ;;  %393 = vmatprep.mubr.f32.mxu1 %v3312_v0  ;;  %v94_v61 = vld [vmem:[#allocation3 + $0xf0] sm:$0xff]  ;;  %v3488_v62 = vpack.c.bf16 %v95_v56, %v91_v54  ;;  %v97_v63 = vld [vmem:[#allocation3 + $0x108] sm:$0xff]  ;;  %v131_v3 = vld [vmem:[%s4086_s0 + $0x18] sm:$0xff]  ;;  %v3495_v4 = vpack.c.bf16 %v92_v58, %v88_v57 }
  0x36   :  { %2459 = vmatprep.subr.bf16.mxu0 %v3465_v43  ;;  %2491 = vmatprep.subr.bf16.mxu1 %v3472_v48  ;;  %v101_v2 = vld [vmem:[#allocation3 + $0x128] sm:$0xff]  ;;  %v99_v5 = vld [vmem:[#allocation3 + $0x118] sm:$0xff]  ;;  %v3499_v7 = vpack.c.bf16 %v94_v61, %v90_v60  ;;  %v96_v8 = vld [vmem:[#allocation3 + $0x100] sm:$0xff] }
  0x37   :  { %2285 = vmatmul.mubr.msk.f32.gmra.mrb[4].mxu0 %vm166_vm3, %v130_v47  ;;  %2295 = vmatmul.mubr.msk.f32.gmra.mrb[4].mxu1 %vm166_vm3, %v130_v47  ;;  %v103_v6 = vld [vmem:[#allocation3 + $0x138] sm:$0xff]  ;;  %v100_v9 = vld [vmem:[#allocation3 + $0x120] sm:$0xff]  ;;  %v3503_v10 = vpack.c.bf16 %v101_v2, %v97_v63  ;;  %v98_v11 = vld [vmem:[#allocation3 + $0x110] sm:$0xff] }
  0x38   :  { %2461 = vmatpush1.bf16.msra.mxu0 %v3476_v51  ;;  %2493 = vmatpush1.bf16.msra.mxu1 %v3480_v55  ;;  %v102_v12 = vld [vmem:[#allocation3 + $0x130] sm:$0xff]  ;;  %v3507_v13 = vpack.c.bf16 %v103_v6, %v99_v5  ;;  %v105_v14 = vld [vmem:[#allocation3 + $0x148] sm:$0xff]  ;;  %v132_v16 = vld [vmem:[%s4086_s0 + $0x20] sm:$0xff]  ;;  %v3514_v17 = vpack.c.bf16 %v100_v9, %v96_v8 }
  0x39   :  { %286 = vmatprep.mubr.f32.mxu0 %v3312_v0  ;;  %399 = vmatprep.mubr.f32.mxu1 %v3312_v0  ;;  %v109_v15 = vld [vmem:[#allocation3 + $0x168] sm:$0xff]  ;;  %v107_v19 = vld [vmem:[#allocation3 + $0x158] sm:$0xff]  ;;  %v3518_v21 = vpack.c.bf16 %v102_v12, %v98_v11  ;;  %v104_v24 = vld [vmem:[#allocation3 + $0x140] sm:$0xff]  ;;  %v146_v11 = vlaneseq }
  0x3a   :  { %2463 = vmatprep.subr.bf16.mxu0 %v3484_v59  ;;  %2495 = vmatprep.subr.bf16.mxu1 %v3488_v62  ;;  %v111_v20 = vld [vmem:[#allocation3 + $0x178] sm:$0xff]  ;;  %v108_v25 = vld [vmem:[#allocation3 + $0x160] sm:$0xff]  ;;  %v3522_v27 = vpack.c.bf16 %v109_v15, %v105_v14  ;;  %v106_v28 = vld [vmem:[#allocation3 + $0x150] sm:$0xff] }
  0x3b   :  { %2286 = vmatmul.mubr.msk.f32.gmra.mrb[6].mxu0 %vm166_vm3, %v131_v3  ;;  %2296 = vmatmul.mubr.msk.f32.gmra.mrb[6].mxu1 %vm166_vm3, %v131_v3  ;;  %v110_v29 = vld [vmem:[#allocation3 + $0x170] sm:$0xff]  ;;  %v3526_v31 = vpack.c.bf16 %v111_v20, %v107_v19  ;;  %v113_v32 = vld [vmem:[#allocation3 + $0x188] sm:$0xff]  ;;  %v3533_v37 = vpack.c.bf16 %v108_v25, %v104_v24  ;;  %v115_v38 = vld [vmem:[#allocation3 + $0x198] sm:$0xff]  ;;  %v3624_v12 = vshrl.u32 %v146_v11, 7 }
  0x3c   :  { %2465 = vmatpush1.bf16.msra.mxu0 %v3495_v4  ;;  %2497 = vmatpush1.bf16.msra.mxu1 %v3499_v7  ;;  %v117_v33 = vld [vmem:[#allocation3 + $0x1a8] sm:$0xff]  ;;  %v119_v40 = vld [vmem:[#allocation3 + $0x1b8] sm:$0xff]  ;;  %v3537_v41 = vpack.c.bf16 %v110_v29, %v106_v28  ;;  %v112_v42 = vld [vmem:[#allocation3 + $0x180] sm:$0xff] }
  0x3d   :  { %292 = vmatprep.mubr.f32.mxu0 %v3312_v0  ;;  %405 = vmatprep.mubr.f32.mxu1 %v3312_v0  ;;  %v133_v34 = vld [vmem:[%s4086_s0 + $0x28] sm:$0xff]  ;;  %v116_v44 = vld [vmem:[#allocation3 + $0x1a0] sm:$0xff]  ;;  %v3541_v45 = vpack.c.bf16 %v117_v33, %v113_v32  ;;  %v114_v46 = vld [vmem:[#allocation3 + $0x190] sm:$0xff]  ;;  %v3545_v49 = vpack.c.bf16 %v119_v40, %v115_v38  ;;  %v148_v14 = vsub.s32 0, %v3624_v12  ;;  %v156_v25 = vsub.s32 2, %v3624_v12 }
  0x3e   :  { %2467 = vmatprep.subr.bf16.mxu0 %v3503_v10  ;;  %2499 = vmatprep.subr.bf16.mxu1 %v3507_v13  ;;  %v118_v47 = vld [vmem:[#allocation3 + $0x1b0] sm:$0xff]  ;;  %v121_v50 = vld [vmem:[#allocation3 + $0x1c8] sm:$0xff]  ;;  %v3552_v54 = vpack.c.bf16 %v116_v44, %v112_v42  ;;  %v123_v56 = vld [vmem:[#allocation3 + $0x1d8] sm:$0xff]  ;;  %v160_v44 = vsub.s32 3, %v3624_v12 }
  0x3f   :  { %2287 = vmatmul.mubr.msk.f32.gmra.mrb[8].mxu0 %vm166_vm3, %v132_v16  ;;  %2297 = vmatmul.mubr.msk.f32.gmra.mrb[8].mxu1 %vm166_vm3, %v132_v16  ;;  %v125_v52 = vld [vmem:[#allocation3 + $0x1e8] sm:$0xff]  ;;  %v134_v53 = vld [vmem:[%s4086_s0 + $0x30] sm:$0xff]  ;;  %v127_v57 = vld [vmem:[#allocation3 + $0x1f8] sm:$0xff]  ;;  %v3556_v58 = vpack.c.bf16 %v118_v47, %v114_v46  ;;  %v152_v16 = vsub.s32 1, %v3624_v12 }
  0x40   :  { %2469 = vmatpush1.bf16.msra.mxu0 %v3514_v17  ;;  %2501 = vmatpush1.bf16.msra.mxu1 %v3518_v21  ;;  %v120_v60 = vld [vmem:[#allocation3 + $0x1c0] sm:$0xff]  ;;  %v3560_v63 = vpack.c.bf16 %v125_v52, %v121_v50  ;;  %v122_v2 = vld [vmem:[#allocation3 + $0x1d0] sm:$0xff]  ;;  %v3564_v5 = vpack.c.bf16 %v127_v57, %v123_v56  ;;  %v135_v6 = vld [vmem:[%s4086_s0 + $0x38] sm:$0xff] }
  0x41   :  { %298 = vmatprep.mubr.f32.mxu0 %v3312_v0  ;;  %411 = vmatprep.mubr.f32.mxu1 %v3312_v0  ;;  %v124_v61 = vld [vmem:[#allocation3 + $0x1e0] sm:$0xff]  ;;  %v126_v3 = vld [vmem:[#allocation3 + $0x1f0] sm:$0xff] }
  0x42   :  { %2471 = vmatprep.subr.bf16.mxu0 %v3522_v27  ;;  %2503 = vmatprep.subr.bf16.mxu1 %v3526_v31  ;;  %v3571_v8 = vpack.c.bf16 %v124_v61, %v120_v60  ;;  %v3575_v9 = vpack.c.bf16 %v126_v3, %v122_v2  ;;  %v144_v15 = vld [vmem:[%s4089_s3] sm:$0xf] }
  0x43   :  { %2288 = vmatmul.mubr.msk.f32.gmra.mrb[10].mxu0 %vm166_vm3, %v133_v34  ;;  %2298 = vmatmul.mubr.msk.f32.gmra.mrb[10].mxu1 %vm166_vm3, %v133_v34  ;;  %v3633_v19 = vrot.slane %v144_v15, %v148_v14  ;;  %v3635_v20 = vrot.slane %v144_v15, %v152_v16  ;;  %v3642_v40 = vrot.slane %v144_v15, %v156_v25 }
  0x44   :  { %2473 = vmatpush1.bf16.msra.mxu0 %v3533_v37  ;;  %2505 = vmatpush1.bf16.msra.mxu1 %v3537_v41  ;;  %v3648_v47 = vrot.slane %v144_v15, %v160_v44 }
  0x45   :  { %304 = vmatprep.mubr.f32.mxu0 %v3312_v0  ;;  %417 = vmatprep.mubr.f32.mxu1 %v3312_v0 }
  0x46   :  { %2475 = vmatprep.subr.bf16.mxu0 %v3541_v45  ;;  %2507 = vmatprep.subr.bf16.mxu1 %v3545_v49 }
  0x47   :  { %2289 = vmatmul.mubr.msk.f32.gmra.mrb[12].mxu0 %vm166_vm3, %v134_v53  ;;  %2299 = vmatmul.mubr.msk.f32.gmra.mrb[12].mxu1 %vm166_vm3, %v134_v53 }
  0x48   :  { %2477 = vmatpush1.bf16.msra.mxu0 %v3552_v54  ;;  %2509 = vmatpush1.bf16.msra.mxu1 %v3556_v58 }
  0x49   :  { %310 = vmatprep.mubr.f32.mxu0 %v3312_v0  ;;  %423 = vmatprep.mubr.f32.mxu1 %v3312_v0 }
  0x4a   :  { %2479 = vmatprep.subr.bf16.mxu0 %v3560_v63  ;;  %2511 = vmatprep.subr.bf16.mxu1 %v3564_v5 }
  0x4b   :  { %2290 = vmatmul.mubr.msk.f32.gmra.mrb[14].mxu0 %vm166_vm3, %v135_v6  ;;  %2300 = vmatmul.mubr.msk.f32.gmra.mrb[14].mxu1 %vm166_vm3, %v135_v6 }
  0x4c   :  { %2481 = vmatpush1.bf16.msra.mxu0 %v3571_v8  ;;  %2513 = vmatpush1.bf16.msra.mxu1 %v3575_v9 }
  0x4d   :  { %533 = vmatprep.mubr.f32.mxu0 %v3312_v0  ;;  %604 = vmatprep.mubr.f32.mxu1 %v3312_v0 }
  0x4e   :  { %2515 = vmatprep.subr.bf16.mxu0 %v3435_v18  ;;  %2547 = vmatprep.subr.bf16.mxu1 %v3439_v22 }
  0x4f   :  { %534 = vmatmul.mubr.f32.vlgmr.msra.gmra.mrb[0].mxu0 %v3312_v0  ;;  %605 = vmatmul.mubr.f32.vlgmr.msra.gmra.mrb[0].mxu1 %v3312_v0 }
  0x50   :  { %2517 = vmatpush1.bf16.msra.mxu0 %v3441_v23  ;;  %2549 = vmatpush1.bf16.msra.mxu1 %v3444_v26 }
  0x51   :  { %2519 = vmatprep.subr.bf16.mxu0 %v3448_v30  ;;  %2551 = vmatprep.subr.bf16.mxu1 %v3455_v35 }
  0x52   :  { %710 = vmatprep.mubr.f32.mxu0 %v3312_v0  ;;  %781 = vmatprep.mubr.f32.mxu1 %v3312_v0 }
  0x54   :  { %2521 = vmatpush1.bf16.msra.mxu0 %v3457_v36  ;;  %2553 = vmatpush1.bf16.msra.mxu1 %v3461_v39 }
  0x55   :  { %2523 = vmatprep.subr.bf16.mxu0 %v3465_v43  ;;  %2555 = vmatprep.subr.bf16.mxu1 %v3472_v48 }
  0x58   :  { %2525 = vmatpush1.bf16.msra.mxu0 %v3476_v51  ;;  %2557 = vmatpush1.bf16.msra.mxu1 %v3480_v55 }
  0x59   :  { %2527 = vmatprep.subr.bf16.mxu0 %v3484_v59  ;;  %2559 = vmatprep.subr.bf16.mxu1 %v3488_v62 }
  0x5c   :  { %2529 = vmatpush1.bf16.msra.mxu0 %v3495_v4  ;;  %2561 = vmatpush1.bf16.msra.mxu1 %v3499_v7 }
  0x5d   :  { %2531 = vmatprep.subr.bf16.mxu0 %v3503_v10  ;;  %2563 = vmatprep.subr.bf16.mxu1 %v3507_v13 }
  0x60   :  { %2533 = vmatpush1.bf16.msra.mxu0 %v3514_v17  ;;  %2565 = vmatpush1.bf16.msra.mxu1 %v3518_v21 }
  0x61   :  { %2535 = vmatprep.subr.bf16.mxu0 %v3522_v27  ;;  %2567 = vmatprep.subr.bf16.mxu1 %v3526_v31 }
  0x64   :  { %2537 = vmatpush1.bf16.msra.mxu0 %v3533_v37  ;;  %2569 = vmatpush1.bf16.msra.mxu1 %v3537_v41 }
  0x65   :  { %2539 = vmatprep.subr.bf16.mxu0 %v3541_v45  ;;  %2571 = vmatprep.subr.bf16.mxu1 %v3545_v49 }
  0x68   :  { %2541 = vmatpush1.bf16.msra.mxu0 %v3552_v54  ;;  %2573 = vmatpush1.bf16.msra.mxu1 %v3556_v58 }
  0x69   :  { %2543 = vmatprep.subr.bf16.mxu0 %v3560_v63  ;;  %2575 = vmatprep.subr.bf16.mxu1 %v3564_v5 }
  0x6c   :  { %2545 = vmatpush1.bf16.msra.mxu0 %v3571_v8  ;;  %2577 = vmatpush1.bf16.msra.mxu1 %v3575_v9 }
  0x6d   :  { %2579 = vmatprep.subr.bf16.mxu0 %v3435_v18  ;;  %2611 = vmatprep.subr.bf16.mxu1 %v3439_v22 }
 0x122   :  { %v535_v24 = vpop.f32.mrb[0].mxu0  ;;  %v606_v29 = vpop.f32.mrb[0].mxu1 }
 0x123   :  { %v3022_v28 = vadd.f32 %v535_v24, %v3633_v19  ;;  %v537_v32 = vpop.f32.mrb[1].mxu0  ;;  %v608_v34 = vpop.f32.mrb[1].mxu1  ;;  %v3038_v46 = vadd.f32 %v606_v29, %v3642_v40 }
 0x124   :  { %v3023_v33 = vadd.f32 %v537_v32, %v3635_v20  ;;  %v3039_v52 = vadd.f32 %v608_v34, %v3648_v47 }
 0x125   :  { %v2301_v38 = vmul.f32 -1.442695, %v3022_v28  ;;  %v2303_v50 = vmul.f32 -1.442695, %v3038_v46 }
 0x126   :  { %v2302_v42 = vmul.f32 -1.442695, %v3023_v33 }
 0x127   :  { %3095 = vpow2.f32 %v2301_v38 }
 0x128   :  { %3097 = vpow2.f32 %v2302_v42 }
 0x129   :  { %3099 = vpow2.f32 %v2303_v50 }
 0x12a   :  { %3101 = vtanh.f32 %v3039_v52 }
 0x131   :  { %v3096_v53 = vpop.eup %3095 }
 0x132   :  { %v624_v56 = vadd.f32 1.0, %v3096_v53  ;;  %v3098_v57 = vpop.eup %3097 }
 0x133   :  { %v625_v60 = vadd.f32 1.0, %v3098_v57  ;;  %v3100_v61 = vpop.eup %3099 }
 0x134   :  { %3103 = vrcp.f32 %v624_v56  ;;  %v3102_v2 = vpop.eup %3101  ;;  %v626_v16 = vadd.f32 1.0, %v3100_v61 }
 0x135   :  { %3105 = vrcp.f32 %v625_v60 }
 0x136   :  { %3107 = vrcp.f32 %v626_v16 }
 0x13e   :  { %v3104_v3 = vpop.eup %3103 }
 0x13f   :  { %v635_v6 = vmul.f32 %v3104_v3, %v3102_v2  ;;  %v3106_v11 = vpop.eup %3105 }
 0x140   :  { %v634_v24 = vmul.f32 0.0, %v3106_v11  ;;  %v3108_v28 = vpop.eup %3107 }
 0x142   :  { %v3651_v15 = vadd.f32 %v635_v6, %v634_v24 }
 0x144   :  { %3109 = vtanh.f32 %v3651_v15 }
 0x14e   :  { %v3110_v29 = vpop.eup %3109 }
 0x14f   :  { %v638_v32 = vmul.f32 %v3110_v29, %v3108_v28 }
 0x151   :  { %711 = vmatmul.mubr.f32.vlgmr.msra.gmra.mrb[2].mxu0 %v638_v32  ;;  %782 = vmatmul.mubr.f32.vlgmr.msra.gmra.mrb[2].mxu1 %v638_v32 }
 0x152   :  { %2581 = vmatpush1.bf16.msra.mxu0 %v3441_v23  ;;  %2613 = vmatpush1.bf16.msra.mxu1 %v3444_v26 }
 0x153   :  { %2583 = vmatprep.subr.bf16.mxu0 %v3448_v30  ;;  %2615 = vmatprep.subr.bf16.mxu1 %v3455_v35 }
 0x154   :  { %887 = vmatprep.mubr.f32.mxu0 %v3312_v0  ;;  %958 = vmatprep.mubr.f32.mxu1 %v3312_v0 }
 0x156   :  { %2585 = vmatpush1.bf16.msra.mxu0 %v3457_v36  ;;  %2617 = vmatpush1.bf16.msra.mxu1 %v3461_v39 }
 0x157   :  { %2587 = vmatprep.subr.bf16.mxu0 %v3465_v43  ;;  %2619 = vmatprep.subr.bf16.mxu1 %v3472_v48 }
 0x15a   :  { %2589 = vmatpush1.bf16.msra.mxu0 %v3476_v51  ;;  %2621 = vmatpush1.bf16.msra.mxu1 %v3480_v55 }
 0x15b   :  { %2591 = vmatprep.subr.bf16.mxu0 %v3484_v59  ;;  %2623 = vmatprep.subr.bf16.mxu1 %v3488_v62 }
 0x15e   :  { %2593 = vmatpush1.bf16.msra.mxu0 %v3495_v4  ;;  %2625 = vmatpush1.bf16.msra.mxu1 %v3499_v7 }
 0x15f   :  { %2595 = vmatprep.subr.bf16.mxu0 %v3503_v10  ;;  %2627 = vmatprep.subr.bf16.mxu1 %v3507_v13 }
 0x162   :  { %2597 = vmatpush1.bf16.msra.mxu0 %v3514_v17  ;;  %2629 = vmatpush1.bf16.msra.mxu1 %v3518_v21 }
 0x163   :  { %2599 = vmatprep.subr.bf16.mxu0 %v3522_v27  ;;  %2631 = vmatprep.subr.bf16.mxu1 %v3526_v31 }
 0x166   :  { %2601 = vmatpush1.bf16.msra.mxu0 %v3533_v37  ;;  %2633 = vmatpush1.bf16.msra.mxu1 %v3537_v41 }
 0x167   :  { %2603 = vmatprep.subr.bf16.mxu0 %v3541_v45  ;;  %2635 = vmatprep.subr.bf16.mxu1 %v3545_v49 }
 0x16a   :  { %2605 = vmatpush1.bf16.msra.mxu0 %v3552_v54  ;;  %2637 = vmatpush1.bf16.msra.mxu1 %v3556_v58 }
 0x16b   :  { %2607 = vmatprep.subr.bf16.mxu0 %v3560_v63  ;;  %2639 = vmatprep.subr.bf16.mxu1 %v3564_v5 }
 0x16e   :  { %2609 = vmatpush1.bf16.msra.mxu0 %v3571_v8  ;;  %2641 = vmatpush1.bf16.msra.mxu1 %v3575_v9 }
 0x16f   :  { %2643 = vmatprep.subr.bf16.mxu0 %v3435_v18  ;;  %2675 = vmatprep.subr.bf16.mxu1 %v3439_v22 }
 0x224   :  { %v712_v33 = vpop.f32.mrb[2].mxu0  ;;  %v783_v34 = vpop.f32.mrb[2].mxu1 }
 0x225   :  { %v3024_v38 = vadd.f32 %v712_v33, %v3633_v19  ;;  %v714_v42 = vpop.f32.mrb[3].mxu0  ;;  %v785_v46 = vpop.f32.mrb[3].mxu1  ;;  %v3040_v56 = vadd.f32 %v783_v34, %v3642_v40 }
 0x226   :  { %v3025_v50 = vadd.f32 %v714_v42, %v3635_v20  ;;  %v3041_v57 = vadd.f32 %v785_v46, %v3648_v47 }
 0x227   :  { %v2304_v52 = vmul.f32 -1.442695, %v3024_v38  ;;  %v2306_v60 = vmul.f32 -1.442695, %v3040_v56 }
 0x228   :  { %v2305_v53 = vmul.f32 -1.442695, %v3025_v50 }
 0x229   :  { %3111 = vpow2.f32 %v2304_v52 }
 0x22a   :  { %3113 = vpow2.f32 %v2305_v53 }
 0x22b   :  { %3115 = vtanh.f32 %v3041_v57 }
 0x22c   :  { %3117 = vpow2.f32 %v2306_v60 }
 0x233   :  { %v3112_v61 = vpop.eup %3111 }
 0x234   :  { %v801_v2 = vadd.f32 1.0, %v3112_v61  ;;  %v3114_v3 = vpop.eup %3113 }
 0x235   :  { %v802_v6 = vadd.f32 1.0, %v3114_v3  ;;  %v3116_v11 = vpop.eup %3115 }
 0x236   :  { %3119 = vrcp.f32 %v801_v2  ;;  %v3118_v16 = vpop.eup %3117 }
 0x237   :  { %3121 = vrcp.f32 %v802_v6  ;;  %v803_v32 = vadd.f32 1.0, %v3118_v16 }
 0x239   :  { %3123 = vrcp.f32 %v803_v32 }
 0x240   :  { %v3120_v24 = vpop.eup %3119 }
 0x241   :  { %v812_v28 = vmul.f32 %v3120_v24, %v3116_v11  ;;  %v3122_v29 = vpop.eup %3121 }
 0x242   :  { %v811_v33 = vmul.f32 %v3122_v29, %v3651_v15 }
 0x243   :  { %v3124_v38 = vpop.eup %3123 }
 0x244   :  { %v3693_v34 = vadd.f32 %v812_v28, %v811_v33 }
 0x246   :  { %3125 = vtanh.f32 %v3693_v34 }
 0x250   :  { %v3126_v42 = vpop.eup %3125 }
 0x251   :  { %v815_v46 = vmul.f32 %v3126_v42, %v3124_v38 }
 0x253   :  { %888 = vmatmul.mubr.f32.vlgmr.msra.gmra.mrb[4].mxu0 %v815_v46  ;;  %959 = vmatmul.mubr.f32.vlgmr.msra.gmra.mrb[4].mxu1 %v815_v46 }
 0x254   :  { %2645 = vmatpush1.bf16.msra.mxu0 %v3441_v23  ;;  %2677 = vmatpush1.bf16.msra.mxu1 %v3444_v26 }
 0x255   :  { %2647 = vmatprep.subr.bf16.mxu0 %v3448_v30  ;;  %2679 = vmatprep.subr.bf16.mxu1 %v3455_v35 }
 0x256   :  { %1064 = vmatprep.mubr.f32.mxu0 %v3312_v0  ;;  %1135 = vmatprep.mubr.f32.mxu1 %v3312_v0 }
 0x258   :  { %2649 = vmatpush1.bf16.msra.mxu0 %v3457_v36  ;;  %2681 = vmatpush1.bf16.msra.mxu1 %v3461_v39 }
 0x259   :  { %2651 = vmatprep.subr.bf16.mxu0 %v3465_v43  ;;  %2683 = vmatprep.subr.bf16.mxu1 %v3472_v48 }
 0x25c   :  { %2653 = vmatpush1.bf16.msra.mxu0 %v3476_v51  ;;  %2685 = vmatpush1.bf16.msra.mxu1 %v3480_v55 }
 0x25d   :  { %2655 = vmatprep.subr.bf16.mxu0 %v3484_v59  ;;  %2687 = vmatprep.subr.bf16.mxu1 %v3488_v62 }
 0x260   :  { %2657 = vmatpush1.bf16.msra.mxu0 %v3495_v4  ;;  %2689 = vmatpush1.bf16.msra.mxu1 %v3499_v7 }
 0x261   :  { %2659 = vmatprep.subr.bf16.mxu0 %v3503_v10  ;;  %2691 = vmatprep.subr.bf16.mxu1 %v3507_v13 }
 0x264   :  { %2661 = vmatpush1.bf16.msra.mxu0 %v3514_v17  ;;  %2693 = vmatpush1.bf16.msra.mxu1 %v3518_v21 }
 0x265   :  { %2663 = vmatprep.subr.bf16.mxu0 %v3522_v27  ;;  %2695 = vmatprep.subr.bf16.mxu1 %v3526_v31 }
 0x268   :  { %2665 = vmatpush1.bf16.msra.mxu0 %v3533_v37  ;;  %2697 = vmatpush1.bf16.msra.mxu1 %v3537_v41 }
 0x269   :  { %2667 = vmatprep.subr.bf16.mxu0 %v3541_v45  ;;  %2699 = vmatprep.subr.bf16.mxu1 %v3545_v49 }
 0x26c   :  { %2669 = vmatpush1.bf16.msra.mxu0 %v3552_v54  ;;  %2701 = vmatpush1.bf16.msra.mxu1 %v3556_v58 }
 0x26d   :  { %2671 = vmatprep.subr.bf16.mxu0 %v3560_v63  ;;  %2703 = vmatprep.subr.bf16.mxu1 %v3564_v5 }
 0x270   :  { %2673 = vmatpush1.bf16.msra.mxu0 %v3571_v8  ;;  %2705 = vmatpush1.bf16.msra.mxu1 %v3575_v9 }
 0x271   :  { %2707 = vmatprep.subr.bf16.mxu0 %v3435_v18  ;;  %2739 = vmatprep.subr.bf16.mxu1 %v3439_v22 }
 0x326   :  { %v889_v15 = vpop.f32.mrb[4].mxu0  ;;  %v960_v50 = vpop.f32.mrb[4].mxu1 }
 0x327   :  { %v3026_v52 = vadd.f32 %v889_v15, %v3633_v19  ;;  %v891_v53 = vpop.f32.mrb[5].mxu0  ;;  %v962_v56 = vpop.f32.mrb[5].mxu1  ;;  %v3042_v2 = vadd.f32 %v960_v50, %v3642_v40 }
 0x328   :  { %v3027_v57 = vadd.f32 %v891_v53, %v3635_v20  ;;  %v3043_v3 = vadd.f32 %v962_v56, %v3648_v47 }
 0x329   :  { %v2307_v60 = vmul.f32 -1.442695, %v3026_v52  ;;  %v2309_v6 = vmul.f32 -1.442695, %v3042_v2 }
 0x32a   :  { %v2308_v61 = vmul.f32 -1.442695, %v3027_v57 }
 0x32b   :  { %3127 = vpow2.f32 %v2307_v60 }
 0x32c   :  { %3129 = vpow2.f32 %v2308_v61 }
 0x32d   :  { %3131 = vtanh.f32 %v3043_v3 }
 0x32e   :  { %3133 = vpow2.f32 %v2309_v6 }
 0x335   :  { %v3128_v11 = vpop.eup %3127 }
 0x336   :  { %v978_v16 = vadd.f32 1.0, %v3128_v11  ;;  %v3130_v24 = vpop.eup %3129 }
 0x337   :  { %v979_v28 = vadd.f32 1.0, %v3130_v24  ;;  %v3132_v29 = vpop.eup %3131 }
 0x338   :  { %3135 = vrcp.f32 %v978_v16  ;;  %v3134_v32 = vpop.eup %3133 }
 0x339   :  { %3137 = vrcp.f32 %v979_v28  ;;  %v980_v46 = vadd.f32 1.0, %v3134_v32 }
 0x33b   :  { %3139 = vrcp.f32 %v980_v46 }
 0x342   :  { %v3136_v33 = vpop.eup %3135 }
 0x343   :  { %v989_v38 = vmul.f32 %v3136_v33, %v3132_v29  ;;  %v3138_v42 = vpop.eup %3137 }
 0x344   :  { %v988_v15 = vmul.f32 %v3138_v42, %v3693_v34 }
 0x345   :  { %v3140_v52 = vpop.eup %3139 }
 0x346   :  { %v3735_v50 = vadd.f32 %v989_v38, %v988_v15 }
 0x348   :  { %3141 = vtanh.f32 %v3735_v50 }
 0x352   :  { %v3142_v53 = vpop.eup %3141 }
 0x353   :  { %v992_v56 = vmul.f32 %v3142_v53, %v3140_v52 }
 0x355   :  { %1065 = vmatmul.mubr.f32.vlgmr.msra.gmra.mrb[6].mxu0 %v992_v56  ;;  %1136 = vmatmul.mubr.f32.vlgmr.msra.gmra.mrb[6].mxu1 %v992_v56 }
 0x356   :  { %2709 = vmatpush1.bf16.msra.mxu0 %v3441_v23  ;;  %2741 = vmatpush1.bf16.msra.mxu1 %v3444_v26 }
 0x357   :  { %2711 = vmatprep.subr.bf16.mxu0 %v3448_v30  ;;  %2743 = vmatprep.subr.bf16.mxu1 %v3455_v35 }
 0x358   :  { %1241 = vmatprep.mubr.f32.mxu0 %v3312_v0  ;;  %1312 = vmatprep.mubr.f32.mxu1 %v3312_v0 }
 0x35a   :  { %2713 = vmatpush1.bf16.msra.mxu0 %v3457_v36  ;;  %2745 = vmatpush1.bf16.msra.mxu1 %v3461_v39 }
 0x35b   :  { %2715 = vmatprep.subr.bf16.mxu0 %v3465_v43  ;;  %2747 = vmatprep.subr.bf16.mxu1 %v3472_v48 }
 0x35e   :  { %2717 = vmatpush1.bf16.msra.mxu0 %v3476_v51  ;;  %2749 = vmatpush1.bf16.msra.mxu1 %v3480_v55 }
 0x35f   :  { %2719 = vmatprep.subr.bf16.mxu0 %v3484_v59  ;;  %2751 = vmatprep.subr.bf16.mxu1 %v3488_v62 }
 0x362   :  { %2721 = vmatpush1.bf16.msra.mxu0 %v3495_v4  ;;  %2753 = vmatpush1.bf16.msra.mxu1 %v3499_v7 }
 0x363   :  { %2723 = vmatprep.subr.bf16.mxu0 %v3503_v10  ;;  %2755 = vmatprep.subr.bf16.mxu1 %v3507_v13 }
 0x366   :  { %2725 = vmatpush1.bf16.msra.mxu0 %v3514_v17  ;;  %2757 = vmatpush1.bf16.msra.mxu1 %v3518_v21 }
 0x367   :  { %2727 = vmatprep.subr.bf16.mxu0 %v3522_v27  ;;  %2759 = vmatprep.subr.bf16.mxu1 %v3526_v31 }
 0x36a   :  { %2729 = vmatpush1.bf16.msra.mxu0 %v3533_v37  ;;  %2761 = vmatpush1.bf16.msra.mxu1 %v3537_v41 }
 0x36b   :  { %2731 = vmatprep.subr.bf16.mxu0 %v3541_v45  ;;  %2763 = vmatprep.subr.bf16.mxu1 %v3545_v49 }
 0x36e   :  { %2733 = vmatpush1.bf16.msra.mxu0 %v3552_v54  ;;  %2765 = vmatpush1.bf16.msra.mxu1 %v3556_v58 }
 0x36f   :  { %2735 = vmatprep.subr.bf16.mxu0 %v3560_v63  ;;  %2767 = vmatprep.subr.bf16.mxu1 %v3564_v5 }
 0x372   :  { %2737 = vmatpush1.bf16.msra.mxu0 %v3571_v8  ;;  %2769 = vmatpush1.bf16.msra.mxu1 %v3575_v9 }
 0x373   :  { %2771 = vmatprep.subr.bf16.mxu0 %v3435_v18  ;;  %2803 = vmatprep.subr.bf16.mxu1 %v3439_v22 }
 0x428   :  { %v1066_v34 = vpop.f32.mrb[6].mxu0  ;;  %v1137_v57 = vpop.f32.mrb[6].mxu1 }
 0x429   :  { %v3028_v60 = vadd.f32 %v1066_v34, %v3633_v19  ;;  %v1068_v61 = vpop.f32.mrb[7].mxu0  ;;  %v1139_v2 = vpop.f32.mrb[7].mxu1  ;;  %v3044_v16 = vadd.f32 %v1137_v57, %v3642_v40 }
 0x42a   :  { %v3029_v3 = vadd.f32 %v1068_v61, %v3635_v20  ;;  %v3045_v24 = vadd.f32 %v1139_v2, %v3648_v47 }
 0x42b   :  { %v2310_v6 = vmul.f32 -1.442695, %v3028_v60  ;;  %v2312_v28 = vmul.f32 -1.442695, %v3044_v16 }
 0x42c   :  { %v2311_v11 = vmul.f32 -1.442695, %v3029_v3 }
 0x42d   :  { %3143 = vpow2.f32 %v2310_v6 }
 0x42e   :  { %3145 = vpow2.f32 %v2311_v11 }
 0x42f   :  { %3147 = vtanh.f32 %v3045_v24 }
 0x430   :  { %3149 = vpow2.f32 %v2312_v28 }
 0x437   :  { %v3144_v29 = vpop.eup %3143 }
 0x438   :  { %v1155_v32 = vadd.f32 1.0, %v3144_v29  ;;  %v3146_v33 = vpop.eup %3145 }
 0x439   :  { %v1156_v38 = vadd.f32 1.0, %v3146_v33  ;;  %v3148_v42 = vpop.eup %3147 }
 0x43a   :  { %3151 = vrcp.f32 %v1155_v32  ;;  %v3150_v46 = vpop.eup %3149 }
 0x43b   :  { %3153 = vrcp.f32 %v1156_v38  ;;  %v1157_v56 = vadd.f32 1.0, %v3150_v46 }
 0x43d   :  { %3155 = vrcp.f32 %v1157_v56 }
 0x444   :  { %v3152_v15 = vpop.eup %3151 }
 0x445   :  { %v1166_v52 = vmul.f32 %v3152_v15, %v3148_v42  ;;  %v3154_v53 = vpop.eup %3153 }
 0x446   :  { %v1165_v34 = vmul.f32 %v3154_v53, %v3735_v50 }
 0x447   :  { %v3156_v60 = vpop.eup %3155 }
 0x448   :  { %v3777_v57 = vadd.f32 %v1166_v52, %v1165_v34 }
 0x44a   :  { %3157 = vtanh.f32 %v3777_v57 }
 0x454   :  { %v3158_v61 = vpop.eup %3157 }
 0x455   :  { %v1169_v2 = vmul.f32 %v3158_v61, %v3156_v60 }
 0x457   :  { %1242 = vmatmul.mubr.f32.vlgmr.msra.gmra.mrb[8].mxu0 %v1169_v2  ;;  %1313 = vmatmul.mubr.f32.vlgmr.msra.gmra.mrb[8].mxu1 %v1169_v2 }
 0x458   :  { %2773 = vmatpush1.bf16.msra.mxu0 %v3441_v23  ;;  %2805 = vmatpush1.bf16.msra.mxu1 %v3444_v26 }
 0x459   :  { %2775 = vmatprep.subr.bf16.mxu0 %v3448_v30  ;;  %2807 = vmatprep.subr.bf16.mxu1 %v3455_v35 }
 0x45a   :  { %1418 = vmatprep.mubr.f32.mxu0 %v3312_v0  ;;  %1489 = vmatprep.mubr.f32.mxu1 %v3312_v0 }
 0x45c   :  { %2777 = vmatpush1.bf16.msra.mxu0 %v3457_v36  ;;  %2809 = vmatpush1.bf16.msra.mxu1 %v3461_v39 }
 0x45d   :  { %2779 = vmatprep.subr.bf16.mxu0 %v3465_v43  ;;  %2811 = vmatprep.subr.bf16.mxu1 %v3472_v48 }
 0x460   :  { %2781 = vmatpush1.bf16.msra.mxu0 %v3476_v51  ;;  %2813 = vmatpush1.bf16.msra.mxu1 %v3480_v55 }
 0x461   :  { %2783 = vmatprep.subr.bf16.mxu0 %v3484_v59  ;;  %2815 = vmatprep.subr.bf16.mxu1 %v3488_v62 }
 0x464   :  { %2785 = vmatpush1.bf16.msra.mxu0 %v3495_v4  ;;  %2817 = vmatpush1.bf16.msra.mxu1 %v3499_v7 }
 0x465   :  { %2787 = vmatprep.subr.bf16.mxu0 %v3503_v10  ;;  %2819 = vmatprep.subr.bf16.mxu1 %v3507_v13 }
 0x468   :  { %2789 = vmatpush1.bf16.msra.mxu0 %v3514_v17  ;;  %2821 = vmatpush1.bf16.msra.mxu1 %v3518_v21 }
 0x469   :  { %2791 = vmatprep.subr.bf16.mxu0 %v3522_v27  ;;  %2823 = vmatprep.subr.bf16.mxu1 %v3526_v31 }
 0x46c   :  { %2793 = vmatpush1.bf16.msra.mxu0 %v3533_v37  ;;  %2825 = vmatpush1.bf16.msra.mxu1 %v3537_v41 }
 0x46d   :  { %2795 = vmatprep.subr.bf16.mxu0 %v3541_v45  ;;  %2827 = vmatprep.subr.bf16.mxu1 %v3545_v49 }
 0x470   :  { %2797 = vmatpush1.bf16.msra.mxu0 %v3552_v54  ;;  %2829 = vmatpush1.bf16.msra.mxu1 %v3556_v58 }
 0x471   :  { %2799 = vmatprep.subr.bf16.mxu0 %v3560_v63  ;;  %2831 = vmatprep.subr.bf16.mxu1 %v3564_v5 }
 0x474   :  { %2801 = vmatpush1.bf16.msra.mxu0 %v3571_v8  ;;  %2833 = vmatpush1.bf16.msra.mxu1 %v3575_v9 }
 0x475   :  { %2835 = vmatprep.subr.bf16.mxu0 %v3435_v18  ;;  %2867 = vmatprep.subr.bf16.mxu1 %v3439_v22 }
 0x52a   :  { %v1243_v50 = vpop.f32.mrb[8].mxu0  ;;  %v1314_v3 = vpop.f32.mrb[8].mxu1 }
 0x52b   :  { %v3030_v6 = vadd.f32 %v1243_v50, %v3633_v19  ;;  %v1245_v11 = vpop.f32.mrb[9].mxu0  ;;  %v1316_v16 = vpop.f32.mrb[9].mxu1  ;;  %v3046_v32 = vadd.f32 %v1314_v3, %v3642_v40 }
 0x52c   :  { %v3031_v24 = vadd.f32 %v1245_v11, %v3635_v20  ;;  %v3047_v33 = vadd.f32 %v1316_v16, %v3648_v47 }
 0x52d   :  { %v2313_v28 = vmul.f32 -1.442695, %v3030_v6  ;;  %v2315_v38 = vmul.f32 -1.442695, %v3046_v32 }
 0x52e   :  { %v2314_v29 = vmul.f32 -1.442695, %v3031_v24 }
 0x52f   :  { %3159 = vpow2.f32 %v2313_v28 }
 0x530   :  { %3161 = vpow2.f32 %v2314_v29 }
 0x531   :  { %3163 = vtanh.f32 %v3047_v33 }
 0x532   :  { %3165 = vpow2.f32 %v2315_v38 }
 0x539   :  { %v3160_v42 = vpop.eup %3159 }
 0x53a   :  { %v1332_v46 = vadd.f32 1.0, %v3160_v42  ;;  %v3162_v15 = vpop.eup %3161 }
 0x53b   :  { %v1333_v52 = vadd.f32 1.0, %v3162_v15  ;;  %v3164_v53 = vpop.eup %3163 }
 0x53c   :  { %3167 = vrcp.f32 %v1332_v46  ;;  %v3166_v56 = vpop.eup %3165 }
 0x53d   :  { %3169 = vrcp.f32 %v1333_v52  ;;  %v1334_v2 = vadd.f32 1.0, %v3166_v56 }
 0x53f   :  { %3171 = vrcp.f32 %v1334_v2 }
 0x546   :  { %v3168_v34 = vpop.eup %3167 }
 0x547   :  { %v1343_v60 = vmul.f32 %v3168_v34, %v3164_v53  ;;  %v3170_v61 = vpop.eup %3169 }
 0x548   :  { %v1342_v50 = vmul.f32 %v3170_v61, %v3777_v57 }
 0x549   :  { %v3172_v6 = vpop.eup %3171 }
 0x54a   :  { %v3819_v3 = vadd.f32 %v1343_v60, %v1342_v50 }
 0x54c   :  { %3173 = vtanh.f32 %v3819_v3 }
 0x556   :  { %v3174_v11 = vpop.eup %3173 }
 0x557   :  { %v1346_v16 = vmul.f32 %v3174_v11, %v3172_v6 }
 0x559   :  { %1419 = vmatmul.mubr.f32.vlgmr.msra.gmra.mrb[10].mxu0 %v1346_v16  ;;  %1490 = vmatmul.mubr.f32.vlgmr.msra.gmra.mrb[10].mxu1 %v1346_v16 }
 0x55a   :  { %2837 = vmatpush1.bf16.msra.mxu0 %v3441_v23  ;;  %2869 = vmatpush1.bf16.msra.mxu1 %v3444_v26 }
 0x55b   :  { %2839 = vmatprep.subr.bf16.mxu0 %v3448_v30  ;;  %2871 = vmatprep.subr.bf16.mxu1 %v3455_v35 }
 0x55c   :  { %1595 = vmatprep.mubr.f32.mxu0 %v3312_v0  ;;  %1666 = vmatprep.mubr.f32.mxu1 %v3312_v0 }
 0x55e   :  { %2841 = vmatpush1.bf16.msra.mxu0 %v3457_v36  ;;  %2873 = vmatpush1.bf16.msra.mxu1 %v3461_v39 }
 0x55f   :  { %2843 = vmatprep.subr.bf16.mxu0 %v3465_v43  ;;  %2875 = vmatprep.subr.bf16.mxu1 %v3472_v48 }
 0x562   :  { %2845 = vmatpush1.bf16.msra.mxu0 %v3476_v51  ;;  %2877 = vmatpush1.bf16.msra.mxu1 %v3480_v55 }
 0x563   :  { %2847 = vmatprep.subr.bf16.mxu0 %v3484_v59  ;;  %2879 = vmatprep.subr.bf16.mxu1 %v3488_v62 }
 0x566   :  { %2849 = vmatpush1.bf16.msra.mxu0 %v3495_v4  ;;  %2881 = vmatpush1.bf16.msra.mxu1 %v3499_v7 }
 0x567   :  { %2851 = vmatprep.subr.bf16.mxu0 %v3503_v10  ;;  %2883 = vmatprep.subr.bf16.mxu1 %v3507_v13 }
 0x56a   :  { %2853 = vmatpush1.bf16.msra.mxu0 %v3514_v17  ;;  %2885 = vmatpush1.bf16.msra.mxu1 %v3518_v21 }
 0x56b   :  { %2855 = vmatprep.subr.bf16.mxu0 %v3522_v27  ;;  %2887 = vmatprep.subr.bf16.mxu1 %v3526_v31 }
 0x56e   :  { %2857 = vmatpush1.bf16.msra.mxu0 %v3533_v37  ;;  %2889 = vmatpush1.bf16.msra.mxu1 %v3537_v41 }
 0x56f   :  { %2859 = vmatprep.subr.bf16.mxu0 %v3541_v45  ;;  %2891 = vmatprep.subr.bf16.mxu1 %v3545_v49 }
 0x572   :  { %2861 = vmatpush1.bf16.msra.mxu0 %v3552_v54  ;;  %2893 = vmatpush1.bf16.msra.mxu1 %v3556_v58 }
 0x573   :  { %2863 = vmatprep.subr.bf16.mxu0 %v3560_v63  ;;  %2895 = vmatprep.subr.bf16.mxu1 %v3564_v5 }
 0x576   :  { %2865 = vmatpush1.bf16.msra.mxu0 %v3571_v8  ;;  %2897 = vmatpush1.bf16.msra.mxu1 %v3575_v9 }
 0x577   :  { %2899 = vmatprep.subr.bf16.mxu0 %v3435_v18  ;;  %2931 = vmatprep.subr.bf16.mxu1 %v3439_v22 }
 0x62c   :  { %v1420_v57 = vpop.f32.mrb[10].mxu0  ;;  %v1491_v24 = vpop.f32.mrb[10].mxu1 }
 0x62d   :  { %v3032_v28 = vadd.f32 %v1420_v57, %v3633_v19  ;;  %v1422_v29 = vpop.f32.mrb[11].mxu0  ;;  %v1493_v32 = vpop.f32.mrb[11].mxu1  ;;  %v3048_v46 = vadd.f32 %v1491_v24, %v3642_v40 }
 0x62e   :  { %v3033_v33 = vadd.f32 %v1422_v29, %v3635_v20  ;;  %v3049_v15 = vadd.f32 %v1493_v32, %v3648_v47  ;;  %v1881_v29 = vld [vmem:[%s4090_s4 + $0x10] sm:$0xff] }
 0x62f   :  { %v2316_v38 = vmul.f32 -1.442695, %v3032_v28  ;;  %v2318_v52 = vmul.f32 -1.442695, %v3048_v46  ;;  %v1885_v32 = vld [vmem:[%s4090_s4 + $0x30] sm:$0x1f] }
 0x630   :  { %v2317_v42 = vmul.f32 -1.442695, %v3033_v33 }
 0x631   :  { %3175 = vpow2.f32 %v2316_v38 }
 0x632   :  { %3177 = vpow2.f32 %v2317_v42 }
 0x633   :  { %3179 = vtanh.f32 %v3049_v15  ;;  %v2971_v15 = vpack.c.bf16 %v1885_v32, %v1881_v29  ;;  %v2107_v29 = vld [vmem:[%s4094_s8 + $0x78] sm:$0xff] }
 0x634   :  { %3181 = vpow2.f32 %v2318_v52  ;;  %v3235_v52 = vld [vmem:[%s4086_s0 + $0x38] sm:$0xff] }
 0x63b   :  { %v3176_v18 = vpop.eup %3175 }
 0x63c   :  { %v1509_v53 = vadd.f32 1.0, %v3176_v18  ;;  %v3178_v22 = vpop.eup %3177  ;;  %v2076_v18 = vld [vmem:[%s4093_s7] sm:$0xff] }
 0x63d   :  { %v1510_v56 = vadd.f32 1.0, %v3178_v22  ;;  %v3180_v34 = vpop.eup %3179  ;;  %v2092_v22 = vld [vmem:[%s4094_s8] sm:$0xff] }
 0x63e   :  { %3183 = vrcp.f32 %v1509_v53  ;;  %v3182_v60 = vpop.eup %3181  ;;  %v2077_v53 = vld [vmem:[%s4093_s7 + $0x8] sm:$0xff] }
 0x63f   :  { %3185 = vrcp.f32 %v1510_v56  ;;  %v1511_v6 = vadd.f32 1.0, %v3182_v60  ;;  %v2999_v1 = vpack.c.bf16 %v2077_v53, %v2076_v18  ;;  %v2093_v56 = vld [vmem:[%s4094_s8 + $0x8] sm:$0xff] }
 0x640   :  { %v2975_v60 = vpack.c.bf16 %v2093_v56, %v2092_v22 }
 0x641   :  { %3187 = vrcp.f32 %v1511_v6  ;;  %v2094_v6 = vld [vmem:[%s4094_s8 + $0x10] sm:$0xff] }
 0x648   :  { %v3184_v61 = vpop.eup %3183 }
 0x649   :  { %v1520_v2 = vmul.f32 %v3184_v61, %v3180_v34  ;;  %v3186_v50 = vpop.eup %3185  ;;  %v3314_v34 = vmov 0.0|0.0   ;;  %v2078_v61 = vld [vmem:[%s4093_s7 + $0x10] sm:$0xff] }
 0x64a   :  { %v1519_v11 = vmul.f32 %v3186_v50, %v3819_v3  ;;  %v1883_v3 = vld [vmem:[%s4090_s4 + $0x20] sm:$0x1f] }
 0x64b   :  { %v3188_v57 = vpop.eup %3187 }
 0x64c   :  { %v3861_v16 = vadd.f32 %v1520_v2, %v1519_v11  ;;  %v2079_v2 = vld [vmem:[%s4093_s7 + $0x18] sm:$0xff] }
 0x64d   :  { %v3002_v50 = vpack.c.bf16 %v2079_v2, %v2078_v61  ;;  %v2095_v11 = vld [vmem:[%s4094_s8 + $0x18] sm:$0xff] }
 0x64e   :  { %3189 = vtanh.f32 %v3861_v16 }
 0x658   :  { %v3190_v24 = vpop.eup %3189 }
 0x659   :  { %v1523_v28 = vmul.f32 %v3190_v24, %v3188_v57  ;;  %v2080_v57 = vld [vmem:[%s4093_s7 + $0x20] sm:$0xff]  ;;  %v2081_v24 = vld [vmem:[%s4093_s7 + $0x28] sm:$0xff] }
 0x65b   :  { %1596 = vmatmul.mubr.f32.vlgmr.msra.gmra.mrb[12].mxu0 %v1523_v28  ;;  %1667 = vmatmul.mubr.f32.vlgmr.msra.gmra.mrb[12].mxu1 %v1523_v28  ;;  %v3005_v28 = vpack.c.bf16 %v2081_v24, %v2080_v57 }
 0x65c   :  { %2901 = vmatpush1.bf16.msra.mxu0 %v3441_v23  ;;  %2933 = vmatpush1.bf16.msra.mxu1 %v3444_v26  ;;  %v1880_v23 = vld [vmem:[%s4090_s4 + $0x8] sm:$0xff] }
 0x65d   :  { %2903 = vmatprep.subr.bf16.mxu0 %v3448_v30  ;;  %2935 = vmatprep.subr.bf16.mxu1 %v3455_v35  ;;  %v1884_v26 = vld [vmem:[%s4090_s4 + $0x28] sm:$0x1f]  ;;  %v1882_v35 = vld [vmem:[%s4090_s4 + $0x18] sm:$0xff] }
 0x65e   :  { %1772 = vmatprep.mubr.f32.mxu0 %v3312_v0  ;;  %1843 = vmatprep.mubr.f32.mxu1 %v3312_v0  ;;  %v2962_v30 = vpack.c.bf16 %v1884_v26, %v1880_v23  ;;  %v2096_v23 = vld [vmem:[%s4094_s8 + $0x20] sm:$0xff]  ;;  %v2097_v26 = vld [vmem:[%s4094_s8 + $0x28] sm:$0xff] }
 0x660   :  { %2905 = vmatpush1.bf16.msra.mxu0 %v3457_v36  ;;  %2937 = vmatpush1.bf16.msra.mxu1 %v3461_v39  ;;  %v1886_v36 = vld [vmem:[%s4090_s4 + $0x38] sm:$0x1f] }
 0x661   :  { %2907 = vmatprep.subr.bf16.mxu0 %v3465_v43  ;;  %2939 = vmatprep.subr.bf16.mxu1 %v3472_v48  ;;  %v2968_v39 = vpack.c.bf16 %v1886_v36, %v1882_v35  ;;  %v2082_v35 = vld [vmem:[%s4093_s7 + $0x30] sm:$0xff]  ;;  %v2083_v36 = vld [vmem:[%s4093_s7 + $0x38] sm:$0xff] }
 0x664   :  { %2909 = vmatpush1.bf16.msra.mxu0 %v3476_v51  ;;  %2941 = vmatpush1.bf16.msra.mxu1 %v3480_v55 }
 0x665   :  { %2911 = vmatprep.subr.bf16.mxu0 %v3484_v59  ;;  %2943 = vmatprep.subr.bf16.mxu1 %v3488_v62 }
 0x668   :  { %2913 = vmatpush1.bf16.msra.mxu0 %v3495_v4  ;;  %2945 = vmatpush1.bf16.msra.mxu1 %v3499_v7 }
 0x669   :  { %2915 = vmatprep.subr.bf16.mxu0 %v3503_v10  ;;  %2947 = vmatprep.subr.bf16.mxu1 %v3507_v13 }
 0x66c   :  { %2917 = vmatpush1.bf16.msra.mxu0 %v3514_v17  ;;  %2949 = vmatpush1.bf16.msra.mxu1 %v3518_v21 }
 0x66d   :  { %2919 = vmatprep.subr.bf16.mxu0 %v3522_v27  ;;  %2951 = vmatprep.subr.bf16.mxu1 %v3526_v31 }
 0x670   :  { %2921 = vmatpush1.bf16.msra.mxu0 %v3533_v37  ;;  %2953 = vmatpush1.bf16.msra.mxu1 %v3537_v41 }
 0x671   :  { %2923 = vmatprep.subr.bf16.mxu0 %v3541_v45  ;;  %2955 = vmatprep.subr.bf16.mxu1 %v3545_v49 }
 0x674   :  { %2925 = vmatpush1.bf16.msra.mxu0 %v3552_v54  ;;  %2957 = vmatpush1.bf16.msra.mxu1 %v3556_v58 }
 0x675   :  { %2927 = vmatprep.subr.bf16.mxu0 %v3560_v63  ;;  %2959 = vmatprep.subr.bf16.mxu1 %v3564_v5 }
 0x678   :  { %2929 = vmatpush1.bf16.msra.mxu0 %v3571_v8  ;;  %2961 = vmatpush1.bf16.msra.mxu1 %v3575_v9  ;;  %v1879_v9 = vld [vmem:[%s4090_s4] sm:$0xff] }
 0x679   :  { %2964 = vmatprep.subr.msk.bf16.mxu0 %vm3398_vm2, %v2962_v30  ;;  %2970 = vmatprep.subr.msk.bf16.mxu1 %vm3398_vm2, %v2968_v39  ;;  %v2965_v42 = vpack.c.bf16 %v1883_v3, %v1879_v9  ;;  %v2981_v30 = vpack.c.bf16 %v2097_v26, %v2096_v23  ;;  %v3008_v39 = vpack.c.bf16 %v2083_v36, %v2082_v35  ;;  %v2091_v9 = vld [vmem:[%s4093_s7 + $0x78] sm:$0xff]  ;;  %v2106_v3 = vld [vmem:[%s4094_s8 + $0x70] sm:$0xff] }
 0x72e   :  { %v1597_v43 = vpop.f32.mrb[12].mxu0  ;;  %v1668_v48 = vpop.f32.mrb[12].mxu1 }
 0x72f   :  { %v3034_v51 = vadd.f32 %v1597_v43, %v3633_v19  ;;  %v1599_v55 = vpop.f32.mrb[13].mxu0  ;;  %v1670_v59 = vpop.f32.mrb[13].mxu1  ;;  %v3050_v10 = vadd.f32 %v1668_v48, %v3642_v40  ;;  %v2098_v43 = vld [vmem:[%s4094_s8 + $0x30] sm:$0xff]  ;;  %v2099_v48 = vld [vmem:[%s4094_s8 + $0x38] sm:$0xff] }
 0x730   :  { %v3035_v62 = vadd.f32 %v1599_v55, %v3635_v20  ;;  %v3051_v13 = vadd.f32 %v1670_v59, %v3648_v47  ;;  %v2084_v55 = vld [vmem:[%s4093_s7 + $0x40] sm:$0xff]  ;;  %v2085_v59 = vld [vmem:[%s4093_s7 + $0x48] sm:$0xff] }
 0x731   :  { %v2319_v4 = vmul.f32 -1.442695, %v3034_v51  ;;  %v2321_v17 = vmul.f32 -1.442695, %v3050_v10  ;;  %v2984_v51 = vpack.c.bf16 %v2099_v48, %v2098_v43 }
 0x732   :  { %v2320_v7 = vmul.f32 -1.442695, %v3035_v62  ;;  %v3011_v62 = vpack.c.bf16 %v2085_v59, %v2084_v55 }
 0x733   :  { %3191 = vpow2.f32 %v2319_v4  ;;  %v2100_v4 = vld [vmem:[%s4094_s8 + $0x40] sm:$0xff] }
 0x734   :  { %3193 = vpow2.f32 %v2320_v7  ;;  %v2101_v7 = vld [vmem:[%s4094_s8 + $0x48] sm:$0xff] }
 0x735   :  { %3195 = vtanh.f32 %v3051_v13  ;;  %v2987_v10 = vpack.c.bf16 %v2101_v7, %v2100_v4  ;;  %v2086_v13 = vld [vmem:[%s4093_s7 + $0x50] sm:$0xff] }
 0x736   :  { %3197 = vpow2.f32 %v2321_v17  ;;  %v2087_v17 = vld [vmem:[%s4093_s7 + $0x58] sm:$0xff] }
 0x73d   :  { %v3192_v21 = vpop.eup %3191 }
 0x73e   :  { %v1686_v27 = vadd.f32 1.0, %v3192_v21  ;;  %v3194_v31 = vpop.eup %3193  ;;  %v3014_v21 = vpack.c.bf16 %v2087_v17, %v2086_v13 }
 0x73f   :  { %v1687_v37 = vadd.f32 1.0, %v3194_v31  ;;  %v3196_v41 = vpop.eup %3195  ;;  %v2103_v31 = vld [vmem:[%s4094_s8 + $0x58] sm:$0xff] }
 0x740   :  { %3199 = vrcp.f32 %v1686_v27  ;;  %v3198_v45 = vpop.eup %3197  ;;  %v2102_v27 = vld [vmem:[%s4094_s8 + $0x50] sm:$0xff] }
 0x741   :  { %3201 = vrcp.f32 %v1687_v37  ;;  %v1688_v63 = vadd.f32 1.0, %v3198_v45  ;;  %v2990_v37 = vpack.c.bf16 %v2103_v31, %v2102_v27  ;;  %v2089_v45 = vld [vmem:[%s4093_s7 + $0x68] sm:$0xff] }
 0x743   :  { %3203 = vrcp.f32 %v1688_v63 }
 0x74a   :  { %v3200_v49 = vpop.eup %3199 }
 0x74b   :  { %v1697_v54 = vmul.f32 %v3200_v49, %v3196_v41  ;;  %v3202_v58 = vpop.eup %3201  ;;  %v2088_v41 = vld [vmem:[%s4093_s7 + $0x60] sm:$0xff] }
 0x74c   :  { %v1696_v5 = vmul.f32 %v3202_v58, %v3861_v16  ;;  %v2978_v16 = vpack.c.bf16 %v2095_v11, %v2094_v6  ;;  %v2104_v49 = vld [vmem:[%s4094_s8 + $0x60] sm:$0xff]  ;;  %v2105_v58 = vld [vmem:[%s4094_s8 + $0x68] sm:$0xff] }
 0x74d   :  { %v3204_v33 = vpop.eup %3203  ;;  %v2993_v63 = vpack.c.bf16 %v2105_v58, %v2104_v49 }
 0x74e   :  { %v3917_v8 = vadd.f32 %v1697_v54, %v1696_v5  ;;  %v3017_v54 = vpack.c.bf16 %v2089_v45, %v2088_v41  ;;  %v2090_v5 = vld [vmem:[%s4093_s7 + $0x70] sm:$0xff] }
 0x74f   :  { %v3020_v32 = vpack.c.bf16 %v2091_v9, %v2090_v5 }
 0x750   :  { %3205 = vtanh.f32 %v3917_v8 }
 0x75a   :  { %v3206_v38 = vpop.eup %3205 }
 0x75b   :  { %v1700_v46 = vmul.f32 %v3206_v38, %v3204_v33  ;;  %v2996_v33 = vpack.c.bf16 %v2107_v29, %v2106_v3  ;;  %v1887_v38 = vld [vmem:[%s4092_s6] sm:$0xf] }
 0x75c   :  { %v1892_v18 = vrot.slane %v1887_v38, %v148_v14  ;;  %v1896_v61 = vrot.slane %v1887_v38, %v156_v25  ;;  %v1900_v57 = vrot.slane %v1887_v38, %v160_v44 }
 0x75d   :  { %1773 = vmatmul.mubr.f32.vlgmr.msra.gmra.mrb[14].mxu0 %v1700_v46  ;;  %1844 = vmatmul.mubr.f32.vlgmr.msra.gmra.mrb[14].mxu1 %v1700_v46 }
 0x75e   :  { %2967 = vmatpush1.bf16.msk.msra.mxu0 %vm3398_vm2, %v2965_v42  ;;  %1983 = vmatprep.mubr.f32.mxu0 %v3312_v0 }
 0x75f   :  { %2973 = vmatpush1.bf16.msk.msra.mxu1 %vm3398_vm2, %v2971_v15  ;;  %2053 = vmatprep.mubr.f32.mxu1 %v3312_v0 }
 0x760   :  { %2998 = vmatprep.subr.bf16.mxu1 %v3314_v34  ;;  %2974 = vmatprep.subr.bf16.mxu0 %v3314_v34 }
 0x761   :  { %2327 = vmatmul.mubr.msk.f32.vlgmr.msra.gmra.mrb[16].mxu0 %vm166_vm3, %v3235_v52 }
 0x762   :  { %2330 = vmatmul.mubr.msk.f32.vlgmr.msra.gmra.mrb[16].mxu1 %vm166_vm3, %v3235_v52  ;;  %2976 = vmatpush3.bf16.msra.mxu0 %v2975_v60 }
 0x763   :  { %3000 = vmatpush3.bf16.msra.mxu1 %v2999_v1  ;;  %2977 = vmatprep.subr.bf16.mxu0 %v3314_v34 }
 0x764   :  { %3001 = vmatprep.subr.bf16.mxu1 %v3314_v34  ;;  %2435 = vmatprep.mubr.msk.f32.mxu1 %vm3315_vm4, %v3312_v0 }
 0x765   :  { %2400 = vmatprep.mubr.msk.f32.mxu0 %vm3315_vm4, %v3312_v0 }
 0x766   :  { %2979 = vmatpush3.bf16.msra.mxu0 %v2978_v16 }
 0x767   :  { %3003 = vmatpush3.bf16.msra.mxu1 %v3002_v50  ;;  %2980 = vmatprep.subr.bf16.mxu0 %v3314_v34 }
 0x768   :  { %3004 = vmatprep.subr.bf16.mxu1 %v3314_v34 }
 0x76a   :  { %2982 = vmatpush3.bf16.msra.mxu0 %v2981_v30 }
 0x76b   :  { %3006 = vmatpush3.bf16.msra.mxu1 %v3005_v28  ;;  %2983 = vmatprep.subr.bf16.mxu0 %v3314_v34 }
 0x76c   :  { %3007 = vmatprep.subr.bf16.mxu1 %v3314_v34 }
 0x76e   :  { %2985 = vmatpush3.bf16.msra.mxu0 %v2984_v51 }
 0x76f   :  { %3009 = vmatpush3.bf16.msra.mxu1 %v3008_v39  ;;  %2986 = vmatprep.subr.bf16.mxu0 %v3314_v34 }
 0x770   :  { %3010 = vmatprep.subr.bf16.mxu1 %v3314_v34 }
 0x772   :  { %2988 = vmatpush3.bf16.msra.mxu0 %v2987_v10 }
 0x773   :  { %3012 = vmatpush3.bf16.msra.mxu1 %v3011_v62  ;;  %2989 = vmatprep.subr.bf16.mxu0 %v3314_v34 }
 0x774   :  { %3013 = vmatprep.subr.bf16.mxu1 %v3314_v34 }
 0x776   :  { %2991 = vmatpush3.bf16.msra.mxu0 %v2990_v37 }
 0x777   :  { %3015 = vmatpush3.bf16.msra.mxu1 %v3014_v21  ;;  %2992 = vmatprep.subr.bf16.mxu0 %v3314_v34 }
 0x778   :  { %3016 = vmatprep.subr.bf16.mxu1 %v3314_v34 }
 0x77a   :  { %2994 = vmatpush3.bf16.msra.mxu0 %v2993_v63 }
 0x77b   :  { %3018 = vmatpush3.bf16.msra.mxu1 %v3017_v54  ;;  %2995 = vmatprep.subr.bf16.mxu0 %v3314_v34 }
 0x77c   :  { %3019 = vmatprep.subr.bf16.mxu1 %v3314_v34 }
 0x77e   :  { %2997 = vmatpush3.bf16.msra.mxu0 %v2996_v33 }
 0x77f   :  { %3021 = vmatpush3.bf16.msra.mxu1 %v3020_v32 }
 0x830   :  { %v1774_v42 = vpop.f32.mrb[14].mxu0  ;;  %v1845_v46 = vpop.f32.mrb[14].mxu1 }
 0x831   :  { %v3036_v15 = vadd.f32 %v1774_v42, %v3633_v19  ;;  %v1776_v52 = vpop.f32.mrb[15].mxu0  ;;  %v1847_v0 = vpop.f32.mrb[15].mxu1  ;;  %v3052_v6 = vadd.f32 %v1845_v46, %v3642_v40 }
 0x832   :  { %v3037_v53 = vadd.f32 %v1776_v52, %v3635_v20  ;;  %v3053_v14 = vadd.f32 %v1847_v0, %v3648_v47 }
 0x833   :  { %v2322_v1 = vmul.f32 -1.442695, %v3036_v15  ;;  %v2324_v20 = vmul.f32 -1.442695, %v3052_v6 }
 0x834   :  { %v2323_v22 = vmul.f32 -1.442695, %v3037_v53  ;;  %v1985_v56 = vpop.f32.mrb[16].mxu0 }
 0x835   :  { %3207 = vpow2.f32 %v2322_v1  ;;  %v1986_v34 = vadd.f32 %v1985_v56, %v1892_v18  ;;  %v1987_v60 = vpop.f32.mrb[17].mxu0  ;;  %v2055_v2 = vpop.f32.mrb[16].mxu1 }
 0x836   :  { %v2057_v50 = vpop.f32.mrb[17].mxu1  ;;  %3209 = vpow2.f32 %v2323_v22  ;;  %v2056_v11 = vadd.f32 %v2055_v2, %v1896_v61 }
 0x837   :  { %v2331_v19 = vmul.f32 -1.442695, %v1986_v34  ;;  %v2058_v23 = vadd.f32 %v2057_v50, %v1900_v57 }
 0x838   :  { %v2332_v16 = vmul.f32 -1.442695, %v2056_v11 }
 0x839   :  { %3211 = vpow2.f32 %v2331_v19 }
 0x83a   :  { %3213 = vtanh.f32 %v3053_v14 }
 0x83b   :  { %3215 = vpow2.f32 %v2324_v20 }
 0x83c   :  { %3217 = vpow2.f32 %v2332_v16 }
 0x83f   :  { %v3208_v24 = vpop.eup %3207 }
 0x840   :  { %v1863_v28 = vadd.f32 1.0, %v3208_v24  ;;  %v3210_v25 = vpop.eup %3209 }
 0x841   :  { %v1864_v26 = vadd.f32 1.0, %v3210_v25 }
 0x842   :  { %3219 = vrcp.f32 %v1863_v28 }
 0x843   :  { %v3212_v30 = vpop.eup %3211  ;;  %3221 = vrcp.f32 %v1864_v26 }
 0x844   :  { %v2066_v40 = vadd.f32 1.0, %v3212_v30  ;;  %3223 = vtanh.f32 %v2058_v23  ;;  %v3214_v47 = vpop.eup %3213 }
 0x845   :  { %v3216_v35 = vpop.eup %3215 }
 0x846   :  { %3225 = vrcp.f32 %v2066_v40  ;;  %v3218_v36 = vpop.eup %3217  ;;  %v1865_v12 = vadd.f32 1.0, %v3216_v35 }
 0x847   :  { %v2067_v48 = vadd.f32 1.0, %v3218_v36 }
 0x848   :  { %3227 = vrcp.f32 %v1865_v12 }
 0x849   :  { %3229 = vrcp.f32 %v2067_v48 }
 0x84c   :  { %v3220_v39 = vpop.eup %3219 }
 0x84d   :  { %v1874_v44 = vmul.f32 %v3220_v39, %v3214_v47  ;;  %v3222_v43 = vpop.eup %3221 }
 0x84e   :  { %v3224_v51 = vpop.eup %3223  ;;  %v1873_v55 = vmul.f32 %v3222_v43, %v3917_v8  ;;  %v2333_v8 = vld [vmem:[%s4095_s9] ss:$0 sm:$0xff] }
 0x850   :  { %v3226_v59 = vpop.eup %3225  ;;  %v1875_v62 = vadd.f32 %v1874_v44, %v1873_v55 }
 0x851   :  { %v2073_v4 = vmul.f32 %v3226_v59, %v3224_v51 }
 0x852   :  { %3231 = vtanh.f32 %v1875_v62  ;;  %v3228_v7 = vpop.eup %3227 }
 0x853   :  { %3233 = vtanh.f32 %v2073_v4  ;;  %v3230_v10 = vpop.eup %3229 }
 0x85c   :  { %v3232_v13 = vpop.eup %3231 }
 0x85d   :  { %v3234_v17 = vpop.eup %3233  ;;  %v1877_v21 = vmul.f32 %v3232_v13, %v3228_v7 }
 0x85e   :  { %v2075_v27 = vmul.f32 %v3234_v17, %v3230_v10 }
 0x85f   :  { %2436 = vmatmul.mubr.f32.vlgmr.msra.gmra.mrb[18].mxu1 %v1877_v21 }
 0x860   :  { %2401 = vmatmul.mubr.f32.vlgmr.msra.gmra.mrb[18].mxu0 %v2075_v27 }
 0x932   :  { %v2244_v31 = vpop.f32.mrb[18].mxu1 }
 0x933   :  { %v2174_v37 = vpop.f32.mrb[18].mxu0  ;;  %v2437_v41 = vpop.f32.mrb[19].mxu1 }
 0x934   :  { %v2245_v45 = vadd.f32 %v2244_v31, %v2174_v37  ;;  %v2402_v49 = vpop.f32.mrb[19].mxu0 }
 0x936   :  { %v2255_v54 = vadd.f32 %v2333_v8, %v2245_v45 }
 0x938   :  { %2257 = vst.msk [vmem:[#allocation8] sm:$0xff] %vm2256_vm5, %v2255_v54 }
 0x939   :  { %3291 = shalt.err (!%p3288_p6)
}
 0x93a   :  { %s3292_s9 = scalar_lea.hbm %s4096_s10, 128 }
 0x93b   :  { %p3293_p7 = scmp.ne.s32.totalorder %s4096_s10, %s3292_s9  ;;  %p3296_p8 = scmp.lt.u32.totalorder %s3292_s9, %s4096_s10 }
 0x93d   :  { %p3298_p9 = pnand %p3296_p8, %p3293_p7 }
 0x93f   :  { %3301 = shalt.err (!%p3298_p9)
}
 0x940   :  { %2267 = dma.vmem_to_hbm [thread:$0]  %s2265_s13, 128, %s4096_s10, [#allocation5]  }
 0x941   :  { %3306 = dma.done.wait [#allocation5], 128  }
 0x942   :  { %3307 = vsyncadd [#allocation5], 4294967168 }
 0x943   :  { %2271 = vsyncpa [#allocation4], 1 }
 0x944   :  { %2272 = vsyncpa [#allocation7], 1 }
 0x945   :  { %2273 = vsyncpa [#allocation5], 1 }

</bundles_post_ra>
